<compile_context>
chip_gen: v6e
topology: v6e:2x2x1
jax: 0.10.0
libtpu: 0.0.40
codegen_flags: <defaults>
</compile_context>

<pallas_src>
import functools

import jax
import jax.numpy as jnp
from jax.experimental import pallas as pl
from jax.experimental.pallas import tpu as pltpu


def _conv_block_kernel(x_ref, w_ref, scale_ref, shift_ref, slope_ref,
                       o_ref, patch_ref,
                       *, kh_size, kw_size, th, wout, cin, stride):
    # x_ref:     (1, Hp, Wp, Cin)        padded input, resident across h tiles
    # w_ref:     (KH*KW*Cin, Cout_p)     im2col-ordered weights (lane-dense N)
    # scale_ref: (1, Cout_p)             per-channel scale (1.0 when no BN)
    # shift_ref: (1, Cout_p)             conv bias (+ folded eval-mode BN)
    # slope_ref: (1, Cout_p)             PReLU slope per channel
    # o_ref:     (1, TH, Wout, Cout_p)   output row tile
    # patch_ref: (TH, Wout, KH*KW*Cin)   VMEM im2col scratch
    h0 = pl.program_id(1) * (th * stride)     # first input row of this tile

    # Build the im2col patch with ref-level slices (no value-level strided
    # slices); each tap is written at its lane offset in the scratch buffer.
    for kh in range(kh_size):
        if stride == 1:
            rows = pl.ds(h0 + kh, th)
        else:
            rows = pl.ds(h0 + kh, th, stride=stride)
        for kw in range(kw_size):
            if stride == 1:
                cols = pl.ds(kw, wout)
            else:
                cols = pl.ds(kw, wout, stride=stride)
            patch_ref[:, :, pl.ds((kh * kw_size + kw) * cin, cin)] = (
                x_ref[0, rows, cols, :])                      # (TH, Wout, Cin)

    k = kh_size * kw_size * cin
    cout_p = w_ref.shape[-1]

    # One MXU matmul with the full contraction K = KH*KW*Cin, f32 accumulation.
    patch = patch_ref[...].reshape(th * wout, k)
    acc = jnp.dot(patch, w_ref[...], preferred_element_type=jnp.float32)

    y = acc * scale_ref[...] + shift_ref[...]                 # bias / BN fold
    y = jnp.where(y > 0, y, slope_ref[...] * y)               # PReLU
    o_ref[0] = y.reshape(th, wout, cout_p).astype(o_ref.dtype)


def _pick_h_tile(hout, wout, cout_p):
    """Largest divisor of Hout keeping the f32 acc tile <= ~16 vregs."""
    target = max(1, 16384 // max(1, wout * cout_p))
    th = 1
    for cand in range(1, hout + 1):
        if cand > target:
            break
        if hout % cand == 0:
            th = cand
    return th


def conv_block_forward(x_nchw, weight_oihw, bias, prelu_weight, *,
                       stride, padding, bn_params=None,
                       compute_dtype=jnp.float32):
    """Forward pass equivalent to ConvBlock.forward (eval mode).

    bn_params: None (isuseBN=False) or (gamma, beta, running_mean,
    running_var, eps) for eval-mode BatchNorm, folded into scale/shift.
    prelu_weight: scalar (num_parameters=1) or per-channel (Cout,) slope.
    compute_dtype: jnp.float32 (default) or jnp.bfloat16 (v6e/v7x) for the
    conv inputs/weights; accumulation and affine/PReLU stay in f32.
    # TODO(synk): training-mode BatchNorm (batch statistics) not implemented.
    """
    N, Cin, H, W = x_nchw.shape
    Cout, _, KH, KW = weight_oihw.shape
    Hout = (H + 2 * padding - KH) // stride + 1
    Wout = (W + 2 * padding - KW) // stride + 1
    Hp, Wp = H + 2 * padding, W + 2 * padding
    K = KH * KW * Cin
    Cout_p = ((Cout + 127) // 128) * 128          # lane-dense output channels

    # Glue: layout transforms + zero padding + param folding (plain JAX).
    # TODO(synk): accept NHWC inputs / fuse the output transpose into the
    # consumer to avoid these extra HBM passes when used inside a network.
    x = jnp.transpose(x_nchw, (0, 2, 3, 1)).astype(compute_dtype)     # NHWC
    x = jnp.pad(x, ((0, 0), (padding, padding), (padding, padding), (0, 0)))

    # Weights in im2col order: k = (kh*KW + kw)*Cin + ci, padded to Cout_p.
    w = jnp.transpose(weight_oihw, (2, 3, 1, 0)).reshape(K, Cout)
    w = jnp.pad(w, ((0, 0), (0, Cout_p - Cout))).astype(compute_dtype)

    b0 = (bias if bias is not None
          else jnp.zeros((Cout,), jnp.float32)).astype(jnp.float32)
    if bn_params is None:
        scale = jnp.ones((Cout,), jnp.float32)
        shift = b0
    else:
        gamma, beta, mean, var, eps = bn_params
        s = gamma.astype(jnp.float32) / jnp.sqrt(var.astype(jnp.float32) + eps)
        scale = s
        shift = (b0 - mean.astype(jnp.float32)) * s + beta.astype(jnp.float32)
    scale = jnp.pad(scale, (0, Cout_p - Cout)).reshape(1, Cout_p)
    shift = jnp.pad(shift, (0, Cout_p - Cout)).reshape(1, Cout_p)

    slope = jnp.asarray(prelu_weight, jnp.float32).reshape(-1)
    slope = jnp.broadcast_to(slope, (Cout,))       # scalar or per-channel
    slope = jnp.pad(slope, (0, Cout_p - Cout)).reshape(1, Cout_p)

    TH = _pick_h_tile(Hout, Wout, Cout_p)
    n_h = Hout // TH

    kernel = functools.partial(
        _conv_block_kernel,
        kh_size=KH, kw_size=KW, th=TH, wout=Wout, cin=Cin, stride=stride)

    # Explicit VMEM budget: inputs/outputs are double-buffered; ~2x headroom.
    in_bytes = jnp.dtype(compute_dtype).itemsize
    block_bytes = 2 * (Hp * Wp * Cin * in_bytes          # input image block
                       + K * Cout_p * in_bytes           # weights
                       + 3 * Cout_p * 4                  # scale/shift/slope
                       + TH * Wout * Cout_p * 4)         # output tile
    block_bytes += TH * Wout * K * in_bytes              # im2col scratch
    vmem_limit = int(min(64 * 2**20, max(2 * block_bytes, 16 * 2**20)))

    out_nhwc = pl.pallas_call(
        kernel,
        out_shape=jax.ShapeDtypeStruct((N, Hout, Wout, Cout_p), jnp.float32),
        grid_spec=pltpu.PrefetchScalarGridSpec(
            num_scalar_prefetch=0,
            grid=(N, n_h),
            in_specs=[
                # Full padded image per batch element; block index depends on
                # n only, so it stays resident in VMEM across the h tiles.
                pl.BlockSpec((1, Hp, Wp, Cin), lambda n, h: (n, 0, 0, 0)),
                pl.BlockSpec((K, Cout_p), lambda n, h: (0, 0)),
                pl.BlockSpec((1, Cout_p), lambda n, h: (0, 0)),
                pl.BlockSpec((1, Cout_p), lambda n, h: (0, 0)),
                pl.BlockSpec((1, Cout_p), lambda n, h: (0, 0)),
            ],
            out_specs=pl.BlockSpec((1, TH, Wout, Cout_p),
                                   lambda n, h: (n, h, 0, 0)),
            scratch_shapes=[pltpu.VMEM((TH, Wout, K), compute_dtype)],
        ),
        compiler_params=pltpu.CompilerParams(
            dimension_semantics=("parallel", "parallel"),
            vmem_limit_bytes=vmem_limit),
    )(x, w, scale, shift, slope)

    out = out_nhwc[..., :Cout]                    # drop channel padding
    return jnp.transpose(out, (0, 3, 1, 2))       # back to NCHW


def _reference(x_nchw, weight_oihw, bias, prelu_weight, *, stride, padding,
               bn_params=None):
    out = jax.lax.conv_general_dilated(
        x_nchw, weight_oihw,
        window_strides=(stride, stride),
        padding=((padding, padding), (padding, padding)),
        dimension_numbers=("NCHW", "OIHW", "NCHW"))
    if bias is not None:
        out = out + bias.reshape(1, -1, 1, 1)
    if bn_params is not None:
        gamma, beta, mean, var, eps = bn_params
        out = ((out - mean.reshape(1, -1, 1, 1))
               / jnp.sqrt(var.reshape(1, -1, 1, 1) + eps)
               * gamma.reshape(1, -1, 1, 1) + beta.reshape(1, -1, 1, 1))
    a = jnp.asarray(prelu_weight, jnp.float32)
    return jnp.where(out > 0, out, a * out)


if __name__ == "__main__":
    # ConvBlock(input_size=4, output_size=8, kernel_size=3, stride=1,
    #           padding=1, bias=True)
    N, Cin, H, W = 2, 4, 16, 16
    Cout, KH, KW = 8, 3, 3
    stride, padding = 1, 1

    key = jax.random.PRNGKey(0)
    kx, kw_, kb, kg, kbe, km, kv = jax.random.split(key, 7)

    x = jax.random.normal(kx, (N, Cin, H, W), jnp.float32)
    fan_in = Cin * KH * KW
    bound = 1.0 / (fan_in ** 0.5)
    weight = jax.random.uniform(kw_, (Cout, Cin, KH, KW), jnp.float32,
                                minval=-bound, maxval=bound)
    bias = jax.random.uniform(kb, (Cout,), jnp.float32,
                              minval=-bound, maxval=bound)
    prelu_weight = jnp.float32(0.25)   # PyTorch PReLU default init

    # --- isuseBN=False ---
    out = conv_block_forward(x, weight, bias, prelu_weight,
                             stride=stride, padding=padding, bn_params=None)
    out = jax.block_until_ready(out)
    ref = _reference(x, weight, bias, prelu_weight,
                     stride=stride, padding=padding, bn_params=None)
    assert out.shape == (N, Cout, H, W), out.shape
    assert jnp.allclose(out, ref, atol=1e-4, rtol=1e-4), \
        float(jnp.max(jnp.abs(out - ref)))

    # --- isuseBN=True (eval-mode BatchNorm folded into scale/shift) ---
    gamma = jax.random.uniform(kg, (Cout,), jnp.float32, minval=0.5, maxval=1.5)
    beta = jax.random.normal(kbe, (Cout,), jnp.float32)
    mean = jax.random.normal(km, (Cout,), jnp.float32)
    var = jax.random.uniform(kv, (Cout,), jnp.float32, minval=0.5, maxval=1.5)
    bn = (gamma, beta, mean, var, 1e-5)
    out_bn = conv_block_forward(x, weight, bias, prelu_weight,
                                stride=stride, padding=padding, bn_params=bn)
    out_bn = jax.block_until_ready(out_bn)
    ref_bn = _reference(x, weight, bias, prelu_weight,
                        stride=stride, padding=padding, bn_params=bn)
    assert jnp.allclose(out_bn, ref_bn, atol=1e-4, rtol=1e-4), \
        float(jnp.max(jnp.abs(out_bn - ref_bn)))

    print("KERNEL_OK")
</pallas_src>

<mosaic_0001>
module attributes {stable_mosaic.version = 11 : i64} {
  func.func @_conv_block_kernel(%arg0: i32, %arg1: i32, %arg2: memref<1x18x18x4xf32, #tpu.memory_space<vmem>>, %arg3: memref<36x128xf32, #tpu.memory_space<vmem>>, %arg4: memref<1x128xf32, #tpu.memory_space<vmem>>, %arg5: memref<1x128xf32, #tpu.memory_space<vmem>>, %arg6: memref<1x128xf32, #tpu.memory_space<vmem>>, %arg7: memref<1x8x16x128xf32, #tpu.memory_space<vmem>>, %arg8: memref<8x16x36xf32, #tpu.memory_space<vmem>>) attributes {dimension_semantics = [#tpu.dimension_semantics<parallel>, #tpu.dimension_semantics<parallel>], iteration_bounds = array<i64: 2, 2>, scalar_prefetch = 0 : i64, scratch_operands = 1 : i64, tpu.core_type = #tpu.core_type<tc>, window_params = [{transform_indices = @transform_0, window_bounds = array<i64: 1, 18, 18, 4>}, {pipeline_mode = #tpu.pipeline_mode<synchronous>, transform_indices = @transform_1, window_bounds = array<i64: 36, 128>}, {pipeline_mode = #tpu.pipeline_mode<synchronous>, transform_indices = @transform_2, window_bounds = array<i64: 1, 128>}, {pipeline_mode = #tpu.pipeline_mode<synchronous>, transform_indices = @transform_3, window_bounds = array<i64: 1, 128>}, {pipeline_mode = #tpu.pipeline_mode<synchronous>, transform_indices = @transform_4, window_bounds = array<i64: 1, 128>}, {transform_indices = @transform_5, window_bounds = array<i64: 1, 8, 16, 128>}]} {
    %c8_i32 = arith.constant 8 : i32
    %0 = arith.muli %arg1, %c8_i32 : i32
    %c0_i32 = arith.constant 0 : i32
    %1 = arith.addi %0, %c0_i32 : i32
    %c0 = arith.constant 0 : index
    %2 = arith.index_cast %1 : i32 to index
    %c0_0 = arith.constant 0 : index
    %c0_1 = arith.constant 0 : index
    %3 = vector.load %arg2[%c0, %2, %c0_0, %c0_1] : memref<1x18x18x4xf32, #tpu.memory_space<vmem>>, vector<1x8x16x4xf32>
    %4 = vector.shape_cast %3 : vector<1x8x16x4xf32> to vector<8x16x4xf32>
    %c0_2 = arith.constant 0 : index
    %c0_3 = arith.constant 0 : index
    %c0_4 = arith.constant 0 : index
    %5 = vector.load %arg8[%c0_2, %c0_3, %c0_4] : memref<8x16x36xf32, #tpu.memory_space<vmem>>, vector<8x16x4xf32>
    tpu.vector_store %arg8[%c0_2, %c0_3, %c0_4], %4 {strides = array<i32>} : memref<8x16x36xf32, #tpu.memory_space<vmem>>, vector<8x16x4xf32>,
    %c0_5 = arith.constant 0 : index
    %6 = arith.index_cast %1 : i32 to index
    %c1 = arith.constant 1 : index
    %c0_6 = arith.constant 0 : index
    %7 = vector.load %arg2[%c0_5, %6, %c1, %c0_6] : memref<1x18x18x4xf32, #tpu.memory_space<vmem>>, vector<1x8x16x4xf32>
    %8 = vector.shape_cast %7 : vector<1x8x16x4xf32> to vector<8x16x4xf32>
    %c0_7 = arith.constant 0 : index
    %c0_8 = arith.constant 0 : index
    %c4 = arith.constant 4 : index
    %9 = vector.load %arg8[%c0_7, %c0_8, %c4] : memref<8x16x36xf32, #tpu.memory_space<vmem>>, vector<8x16x4xf32>
    tpu.vector_store %arg8[%c0_7, %c0_8, %c4], %8 {strides = array<i32>} : memref<8x16x36xf32, #tpu.memory_space<vmem>>, vector<8x16x4xf32>,
    %c0_9 = arith.constant 0 : index
    %10 = arith.index_cast %1 : i32 to index
    %c2 = arith.constant 2 : index
    %c0_10 = arith.constant 0 : index
    %11 = vector.load %arg2[%c0_9, %10, %c2, %c0_10] : memref<1x18x18x4xf32, #tpu.memory_space<vmem>>, vector<1x8x16x4xf32>
    %12 = vector.shape_cast %11 : vector<1x8x16x4xf32> to vector<8x16x4xf32>
    %c0_11 = arith.constant 0 : index
    %c0_12 = arith.constant 0 : index
    %c8 = arith.constant 8 : index
    %13 = vector.load %arg8[%c0_11, %c0_12, %c8] : memref<8x16x36xf32, #tpu.memory_space<vmem>>, vector<8x16x4xf32>
    tpu.vector_store %arg8[%c0_11, %c0_12, %c8], %12 {strides = array<i32>} : memref<8x16x36xf32, #tpu.memory_space<vmem>>, vector<8x16x4xf32>,
    %c1_i32 = arith.constant 1 : i32
    %14 = arith.addi %0, %c1_i32 : i32
    %c0_13 = arith.constant 0 : index
    %15 = arith.index_cast %14 : i32 to index
    %c0_14 = arith.constant 0 : index
    %c0_15 = arith.constant 0 : index
    %16 = vector.load %arg2[%c0_13, %15, %c0_14, %c0_15] : memref<1x18x18x4xf32, #tpu.memory_space<vmem>>, vector<1x8x16x4xf32>
    %17 = vector.shape_cast %16 : vector<1x8x16x4xf32> to vector<8x16x4xf32>
    %c0_16 = arith.constant 0 : index
    %c0_17 = arith.constant 0 : index
    %c12 = arith.constant 12 : index
    %18 = vector.load %arg8[%c0_16, %c0_17, %c12] : memref<8x16x36xf32, #tpu.memory_space<vmem>>, vector<8x16x4xf32>
    tpu.vector_store %arg8[%c0_16, %c0_17, %c12], %17 {strides = array<i32>} : memref<8x16x36xf32, #tpu.memory_space<vmem>>, vector<8x16x4xf32>,
    %c0_18 = arith.constant 0 : index
    %19 = arith.index_cast %14 : i32 to index
    %c1_19 = arith.constant 1 : index
    %c0_20 = arith.constant 0 : index
    %20 = vector.load %arg2[%c0_18, %19, %c1_19, %c0_20] : memref<1x18x18x4xf32, #tpu.memory_space<vmem>>, vector<1x8x16x4xf32>
    %21 = vector.shape_cast %20 : vector<1x8x16x4xf32> to vector<8x16x4xf32>
    %c0_21 = arith.constant 0 : index
    %c0_22 = arith.constant 0 : index
    %c16 = arith.constant 16 : index
    %22 = vector.load %arg8[%c0_21, %c0_22, %c16] : memref<8x16x36xf32, #tpu.memory_space<vmem>>, vector<8x16x4xf32>
    tpu.vector_store %arg8[%c0_21, %c0_22, %c16], %21 {strides = array<i32>} : memref<8x16x36xf32, #tpu.memory_space<vmem>>, vector<8x16x4xf32>,
    %c0_23 = arith.constant 0 : index
    %23 = arith.index_cast %14 : i32 to index
    %c2_24 = arith.constant 2 : index
    %c0_25 = arith.constant 0 : index
    %24 = vector.load %arg2[%c0_23, %23, %c2_24, %c0_25] : memref<1x18x18x4xf32, #tpu.memory_space<vmem>>, vector<1x8x16x4xf32>
    %25 = vector.shape_cast %24 : vector<1x8x16x4xf32> to vector<8x16x4xf32>
    %c0_26 = arith.constant 0 : index
    %c0_27 = arith.constant 0 : index
    %c20 = arith.constant 20 : index
    %26 = vector.load %arg8[%c0_26, %c0_27, %c20] : memref<8x16x36xf32, #tpu.memory_space<vmem>>, vector<8x16x4xf32>
    tpu.vector_store %arg8[%c0_26, %c0_27, %c20], %25 {strides = array<i32>} : memref<8x16x36xf32, #tpu.memory_space<vmem>>, vector<8x16x4xf32>,
    %c2_i32 = arith.constant 2 : i32
    %27 = arith.addi %0, %c2_i32 : i32
    %c0_28 = arith.constant 0 : index
    %28 = arith.index_cast %27 : i32 to index
    %c0_29 = arith.constant 0 : index
    %c0_30 = arith.constant 0 : index
    %29 = vector.load %arg2[%c0_28, %28, %c0_29, %c0_30] : memref<1x18x18x4xf32, #tpu.memory_space<vmem>>, vector<1x8x16x4xf32>
    %30 = vector.shape_cast %29 : vector<1x8x16x4xf32> to vector<8x16x4xf32>
    %c0_31 = arith.constant 0 : index
    %c0_32 = arith.constant 0 : index
    %c24 = arith.constant 24 : index
    %31 = vector.load %arg8[%c0_31, %c0_32, %c24] : memref<8x16x36xf32, #tpu.memory_space<vmem>>, vector<8x16x4xf32>
    tpu.vector_store %arg8[%c0_31, %c0_32, %c24], %30 {strides = array<i32>} : memref<8x16x36xf32, #tpu.memory_space<vmem>>, vector<8x16x4xf32>,
    %c0_33 = arith.constant 0 : index
    %32 = arith.index_cast %27 : i32 to index
    %c1_34 = arith.constant 1 : index
    %c0_35 = arith.constant 0 : index
    %33 = vector.load %arg2[%c0_33, %32, %c1_34, %c0_35] : memref<1x18x18x4xf32, #tpu.memory_space<vmem>>, vector<1x8x16x4xf32>
    %34 = vector.shape_cast %33 : vector<1x8x16x4xf32> to vector<8x16x4xf32>
    %c0_36 = arith.constant 0 : index
    %c0_37 = arith.constant 0 : index
    %c28 = arith.constant 28 : index
    %35 = vector.load %arg8[%c0_36, %c0_37, %c28] : memref<8x16x36xf32, #tpu.memory_space<vmem>>, vector<8x16x4xf32>
    tpu.vector_store %arg8[%c0_36, %c0_37, %c28], %34 {strides = array<i32>} : memref<8x16x36xf32, #tpu.memory_space<vmem>>, vector<8x16x4xf32>,
    %c0_38 = arith.constant 0 : index
    %36 = arith.index_cast %27 : i32 to index
    %c2_39 = arith.constant 2 : index
    %c0_40 = arith.constant 0 : index
    %37 = vector.load %arg2[%c0_38, %36, %c2_39, %c0_40] : memref<1x18x18x4xf32, #tpu.memory_space<vmem>>, vector<1x8x16x4xf32>
    %38 = vector.shape_cast %37 : vector<1x8x16x4xf32> to vector<8x16x4xf32>
    %c0_41 = arith.constant 0 : index
    %c0_42 = arith.constant 0 : index
    %c32 = arith.constant 32 : index
    %39 = vector.load %arg8[%c0_41, %c0_42, %c32] : memref<8x16x36xf32, #tpu.memory_space<vmem>>, vector<8x16x4xf32>
    tpu.vector_store %arg8[%c0_41, %c0_42, %c32], %38 {strides = array<i32>} : memref<8x16x36xf32, #tpu.memory_space<vmem>>, vector<8x16x4xf32>,
    %c0_43 = arith.constant 0 : index
    %c0_44 = arith.constant 0 : index
    %c0_45 = arith.constant 0 : index
    %40 = vector.load %arg8[%c0_43, %c0_44, %c0_45] : memref<8x16x36xf32, #tpu.memory_space<vmem>>, vector<8x16x36xf32>
    %41 = vector.shape_cast %40 : vector<8x16x36xf32> to vector<128x36xf32>
    %c0_46 = arith.constant 0 : index
    %c0_47 = arith.constant 0 : index
    %42 = vector.load %arg3[%c0_46, %c0_47] : memref<36x128xf32, #tpu.memory_space<vmem>>, vector<36x128xf32>
    %cst = arith.constant dense<0.000000e+00> : vector<128x128xf32>
    %43 = tpu.matmul %41, %42, %cst {dimension_numbers = #tpu.dot_dimension_numbers<[1], [0], [0], [1], [0, 0, 1, 1], [], []>} : vector<128x36xf32>, vector<36x128xf32>, vector<128x128xf32> -> vector<128x128xf32>
    %c0_48 = arith.constant 0 : index
    %c0_49 = arith.constant 0 : index
    %44 = vector.load %arg4[%c0_48, %c0_49] : memref<1x128xf32, #tpu.memory_space<vmem>>, vector<1x128xf32>
    %45 = vector.broadcast %44 : vector<1x128xf32> to vector<128x128xf32>
    %46 = arith.mulf %43, %45 : vector<128x128xf32>
    %c0_50 = arith.constant 0 : index
    %c0_51 = arith.constant 0 : index
    %47 = vector.load %arg5[%c0_50, %c0_51] : memref<1x128xf32, #tpu.memory_space<vmem>>, vector<1x128xf32>
    %48 = vector.broadcast %47 : vector<1x128xf32> to vector<128x128xf32>
    %49 = arith.addf %46, %48 : vector<128x128xf32>
    %cst_52 = arith.constant 0.000000e+00 : f32
    %50 = vector.broadcast %cst_52 : f32 to vector<128x128xf32>
    %51 = arith.cmpf ogt, %49, %50 : vector<128x128xf32>
    %c0_53 = arith.constant 0 : index
    %c0_54 = arith.constant 0 : index
    %52 = vector.load %arg6[%c0_53, %c0_54] : memref<1x128xf32, #tpu.memory_space<vmem>>, vector<1x128xf32>
    %53 = vector.broadcast %52 : vector<1x128xf32> to vector<128x128xf32>
    %54 = arith.mulf %53, %49 : vector<128x128xf32>
    %55 = arith.select %51, %49, %54 : vector<128x128xi1>, vector<128x128xf32>
    %56 = vector.shape_cast %55 : vector<128x128xf32> to vector<8x16x128xf32>
    %c0_55 = arith.constant 0 : index
    %c0_56 = arith.constant 0 : index
    %c0_57 = arith.constant 0 : index
    %c0_58 = arith.constant 0 : index
    %57 = vector.load %arg7[%c0_55, %c0_56, %c0_57, %c0_58] : memref<1x8x16x128xf32, #tpu.memory_space<vmem>>, vector<1x8x16x128xf32>
    %58 = vector.shape_cast %57 : vector<1x8x16x128xf32> to vector<8x16x128xf32>
    %59 = vector.shape_cast %56 : vector<8x16x128xf32> to vector<1x8x16x128xf32>
    tpu.vector_store %arg7[%c0_55, %c0_56, %c0_57, %c0_58], %59 {strides = array<i32>} : memref<1x8x16x128xf32, #tpu.memory_space<vmem>>, vector<1x8x16x128xf32>,
    return
  }
  func.func @transform_0(%arg0: i32, %arg1: i32) -> (i32, i32, i32, i32) {
    %c0_i32 = arith.constant 0 : i32
    %c0_i32_0 = arith.constant 0 : i32
    %c0_i32_1 = arith.constant 0 : i32
    %c0_i32_2 = arith.constant 0 : i32
    return %arg0, %c0_i32, %c0_i32_0, %c0_i32_1 : i32, i32, i32, i32
  }
  func.func @transform_1(%arg0: i32, %arg1: i32) -> (i32, i32) {
    %c0_i32 = arith.constant 0 : i32
    %c0_i32_0 = arith.constant 0 : i32
    %c0_i32_1 = arith.constant 0 : i32
    return %c0_i32, %c0_i32_0 : i32, i32
  }
  func.func @transform_2(%arg0: i32, %arg1: i32) -> (i32, i32) {
    %c0_i32 = arith.constant 0 : i32
    %c0_i32_0 = arith.constant 0 : i32
    %c0_i32_1 = arith.constant 0 : i32
    return %c0_i32, %c0_i32_0 : i32, i32
  }
  func.func @transform_3(%arg0: i32, %arg1: i32) -> (i32, i32) {
    %c0_i32 = arith.constant 0 : i32
    %c0_i32_0 = arith.constant 0 : i32
    %c0_i32_1 = arith.constant 0 : i32
    return %c0_i32, %c0_i32_0 : i32, i32
  }
  func.func @transform_4(%arg0: i32, %arg1: i32) -> (i32, i32) {
    %c0_i32 = arith.constant 0 : i32
    %c0_i32_0 = arith.constant 0 : i32
    %c0_i32_1 = arith.constant 0 : i32
    return %c0_i32, %c0_i32_0 : i32, i32
  }
  func.func @transform_5(%arg0: i32, %arg1: i32) -> (i32, i32, i32, i32) {
    %c0_i32 = arith.constant 0 : i32
    %c0_i32_0 = arith.constant 0 : i32
    %c0_i32_1 = arith.constant 0 : i32
    return %arg0, %arg1, %c0_i32, %c0_i32_0 : i32, i32, i32, i32
  }
}

</mosaic_0001>

<bundles_post_ra>
// kernel: tpu_custom_call.1
= control target key start
LH: loop header
LB: loop body
LE: loop exit
PB: predicated region body
PF: predicated region fallthrough
CT: control target
= control target key end

     0   :  { %10 = vsyncpa [#allocation4], 0  ;;  %s2602_s0 = inlined_call_operand.vmem [shape: f32[2,18,18,4], index: 0, kind: input, shape index: {}]   ;;  %s2603_s1 = inlined_call_operand.vmem [shape: f32[36,128], index: 1, kind: input, shape index: {}]   ;;  %s2604_s2 = inlined_call_operand.vmem [shape: f32[1,128], index: 2, kind: input, shape index: {}]   ;;  %s2605_s3 = inlined_call_operand.vmem [shape: f32[1,128], index: 3, kind: input, shape index: {}]   ;;  %s2606_s4 = inlined_call_operand.vmem [shape: f32[1,128], index: 4, kind: input, shape index: {}]   ;;  %s2607_s5 = inlined_call_operand.hbm [shape: f32[2,16,16,128], index: 5, kind: output, shape index: {}]  }
   0x1   :  { %12 = vsyncpa [#allocation4 + $0x1], 0  ;;  %s1912_s18 = smov 0   ;;  %s1914_s19 = smov 0  }
   0x2   :  { %s1916_s20 = smov 0   ;;  %s1918_s21 = smov 0  }
   0x3   :  { %s1920_s22 = smov 0   ;;  %s1922_s23 = smov 0  }
   0x4   :  { %s1924_s24 = smov 0   ;;  %s1926_s25 = smov 0  }
   0x5 LB: > { %s1495_s26 = sadd.s32 4294967295, %s1870_s25   ;;  %s1496_s27 = sadd.s32 4294967294, %s1870_s25   ;;  %s1870_s25 = sphi %s1926_s25, %s18_s25   ;;  %s1866_s24 = sphi %s1924_s24, %s2625_s24   ;;  %s1862_s23 = sphi %s1922_s23, %s2624_s23   ;;  %s1858_s22 = sphi %s1920_s22, %s2623_s22   ;;  %s1854_s21 = sphi %s1918_s21, %s2622_s21   ;;  %s1850_s20 = sphi %s1916_s20, %s2621_s20   ;;  %s1846_s19 = sphi %s1914_s19, %s2620_s19   ;;  %s1842_s18 = sphi %s1912_s18, %s2619_s18  }
   0x6   : > { %s27_s28 = sadd.s32 1, %s1862_s23  ;;  %s30_s29 = sadd.s32 1, %s1866_s24 }
   0x7   : > { %p28_p0 = scmp.ge.s32.totalorder %s27_s28, 2  ;;  %p159_p1 = scmp.ne.s32.totalorder %s1850_s20, %s1846_s19 }
   0x8   : > { %p160_p2 = scmp.eq.s32.totalorder %s1495_s26, 3  ;;  %p165_p5 = scmp.ne.s32.totalorder %s1846_s19, %s1842_s18 }
   0x9   : > { %s2627_s28 = smov (%p28_p0, %s27_s28), 0  ;;  %s2629_s29 = smov (!%p28_p0, %s30_s29), %s1866_s24 }
   0xa   : > { %s145_s30 = ssub.s32 %s1862_s23, %s2627_s28  ;;  %p1963_p3 = por %p160_p2, %p159_p1 }
   0xb   : > { %p32_p4 = scmp.ge.s32.totalorder %s2629_s29, 2  ;;  %p166_p6 = scmp.eq.s32.totalorder %s1496_s27, 3 }
   0xc   : > { %p1499_p7 = scmp.ge.s32.totalorder %s1870_s25, 1  ;;  %p204_p9 = scmp.lt.s32.totalorder %s1870_s25, 5 }
   0xd   : > { %s2631_s29 = smov (%p32_p4, %s2629_s29), 0  ;;  %p1972_p8 = por %p166_p6, %p165_p5 }
   0xe   : > { %s144_s8 = ssub.s32 %s1866_s24, %s2631_s29  ;;  %s149_s9 = sadd.s32 1, %s1850_s20 }
   0xf   : > { %s146_s10 = sor.u32 %s145_s30, %s144_s8  ;;  %p205_p10 = pnand %p1499_p7, %p204_p9 }
  0x10   : > { %p147_p11 = scmp.eq.s32.totalorder %s146_s10, 0  ;;  %p232_p12 = scmp.lt.s32.totalorder (!%p205_p10), %s1858_s22, 1 }
  0x11   : > { %208 = sbr.rel (%p205_p10) target bundleno = 621 (0x26d), region = 40  ;;  %s1872_s27 = smov (!%p205_p10), 4  }
  0x12   : > { %s1981_s11 = scalar_select %p147_p11, %s1850_s20, %s149_s9  }
  0x13   : > { %s1503_s13 = smul.u32 (!%p205_p10), 192, %s1854_s21  ;;  %s1873_s30 = smov (!%p205_p10), 8  }
  0x14   : > { %s2608_s8 = smov (!%p205_p10), 12   ;;  %s1875_s9 = smov (!%p205_p10), 16  }
  0x15   : > { %s1876_s10 = smov (!%p205_p10), 20   ;;  %s2618_s15 = smov (!%p205_p10), 28  }
  0x16   : > { %s233_s12 = scalar_select %p232_p12, %s1858_s22, 1  ;;  %vm257_vm0 = vcmask 31744   ;;  %v1076_v38 = vld [vmem:[%s2603_s1 + $0x20] sm:$0xf]  ;;  %vm1126_vm1 = vcmask 1043456   ;;  %v1075_v39 = vld [vmem:[%s2603_s1 + $0x18] sm:$0xff] }
  0x17   : > { %1653 = vmatprep.subr.msk.mxu0 %vm1126_vm1, %v1076_v38  ;;  %1687 = vmatprep.subr.msk.mxu1 %vm1126_vm1, %v1076_v38  ;;  %v1074_v40 = vld [vmem:[%s2603_s1 + $0x10] sm:$0xff]  ;;  %v1073_v41 = vld [vmem:[%s2603_s1 + $0x8] sm:$0xff]  ;;  %v1072_v42 = vld [vmem:[%s2603_s1] sm:$0xff]  ;;  %vm354_vm2 = vcmask 64544   ;;  %vm451_vm3 = vcmask 97344   ;;  %vm551_vm4 = vcmask 130144  }
  0x18   : > { %s1697_s14 = smul.u32 432, %s233_s12  ;;  %s2612_s12 = smov 24   ;;  %1654 = vmatpush3.msk.msra.mxu0 %vm1126_vm1, %v1076_v38  ;;  %1692 = vmatpush3.msk.msra.mxu1 %vm1126_vm1, %v1076_v38  ;;  %vm648_vm5 = vcmask 162944   ;;  %vm745_vm6 = vcmask 195744   ;;  %vm845_vm7 = vcmask 228544   ;;  %vm942_vm8 = vcmask 261344  }
  0x19   : > { %1655 = vmatprep.subr.mxu0 %v1075_v39  ;;  %1688 = vmatprep.subr.mxu1 %v1075_v39  ;;  %vm1039_vm9 = vcmask 294144   ;;  %vm1077_vm10 = vcmask 293888  }
  0x1a   : > { %s236_s17 = scalar_lea.vmem %s2602_s0, %s1697_s14  ;;  %s1879_s14 = smov 32   ;;  %1656 = vmatpush3.msra.mxu0 %v1075_v39  ;;  %1693 = vmatpush3.msra.mxu1 %v1075_v39 }
  0x1b   : > { %s1989_s26 = scalar_lea.vmem %s236_s17, %s1503_s13  ;;  %s2610_s13 = smov 28   ;;  %1657 = vmatprep.subr.mxu0 %v1074_v40  ;;  %1689 = vmatprep.subr.mxu1 %v1074_v40 }
  0x1c   : > { %v275_v0 = vld [vmem:[%s1989_s26 + $0x9] sm:$0xff]  ;;  %v274_v1 = vld [vmem:[%s1989_s26 + $0x1] sm:$0xff]  ;;  %v2002_v4 = vld [vmem:[%s1989_s26 + $0x78] sm:$0xff]  ;;  %1658 = vmatpush3.msra.mxu0 %v1074_v40  ;;  %1694 = vmatpush3.msra.mxu1 %v1074_v40  ;;  %s1880_s17 = smov [#allocation3]  }
  0x1d   : > { %308 = vrot.lane.b32.xlu1 %v275_v0, %s1872_s27  ;;  %306 = vrot.lane.b32.xlu0 %v274_v1, %s1872_s27  ;;  %v1996_v2 = vld [vmem:[%s1989_s26 + $0x69] sm:$0xff]  ;;  %v1999_v3 = vld [vmem:[%s1989_s26 + $0x61] sm:$0xff]  ;;  %268 = vst.msk [vmem:[#allocation2 + $0x50] sm:$0xff] %vm257_vm0, %v2002_v4 }
  0x1e   : > { %v1506_v5 = vld [vmem:[%s1989_s26 + $0x18] sm:$0xff]  ;;  %v2006_v6 = vld [vmem:[%s1989_s26 + $0x80] sm:$0xff]  ;;  %v2024_v10 = vld [vmem:[%s1989_s26 + $0x90] sm:$0xff]  ;;  %1659 = vmatprep.subr.mxu0 %v1073_v41  ;;  %1690 = vmatprep.subr.mxu1 %v1073_v41 }
  0x1f   : > { %v1507_v7 = vld [vmem:[%s1989_s26 + $0x20] sm:$0xff]  ;;  %260 = vst.msk [vmem:[#allocation2 + $0x10] sm:$0xff] %vm257_vm0, %v1506_v5  ;;  %269 = vst.msk [vmem:[#allocation2 + $0x58] sm:$0xff] %vm257_vm0, %v2006_v6  ;;  %v2027_v11 = vld [vmem:[%s1989_s26 + $0x30] sm:$0xff]  ;;  %1660 = vmatpush3.msra.mxu0 %v1073_v41  ;;  %1695 = vmatpush3.msra.mxu1 %v1073_v41 }
  0x20   : > { %261 = vst.msk [vmem:[#allocation2 + $0x18] sm:$0xff] %vm257_vm0, %v1507_v7  ;;  %v2020_v8 = vld [vmem:[%s1989_s26 + $0x62] sm:$0xff]  ;;  %v2030_v12 = vld [vmem:[%s1989_s26 + $0x98] sm:$0xff]  ;;  %270 = vst.msk [vmem:[#allocation2 + $0x60] sm:$0xff] %vm257_vm0, %v2024_v10  ;;  %1661 = vmatprep.subr.mxu0 %v1072_v42  ;;  %1691 = vmatprep.subr.mxu1 %v1072_v42 }
  0x21   : > { %324 = vrot.lane.b32.xlu1 %v1996_v2, %s1872_s27  ;;  %322 = vrot.lane.b32.xlu0 %v1999_v3, %s1872_s27  ;;  %v371_v9 = vld [vmem:[%s1989_s26 + $0x2] sm:$0xff]  ;;  %v2033_v13 = vld [vmem:[%s1989_s26 + $0x38] sm:$0xff]  ;;  %262 = vst.msk [vmem:[#allocation2 + $0x20] sm:$0xff] %vm257_vm0, %v2027_v11  ;;  %271 = vst.msk [vmem:[#allocation2 + $0x68] sm:$0xff] %vm257_vm0, %v2030_v12 }
  0x22   : > { %263 = vst.msk [vmem:[#allocation2 + $0x28] sm:$0xff] %vm257_vm0, %v2033_v13  ;;  %v2047_v14 = vld [vmem:[%s1989_s26 + $0x6a] sm:$0xff]  ;;  %v241_v17 = vld [vmem:[%s1989_s26] sm:$0xff]  ;;  %v1596_v36 = vld [vmem:[%s1989_s26 + $0x92] sm:$0xff]  ;;  %1662 = vmatpush3.msra.mxu0 %v1072_v42  ;;  %1696 = vmatpush3.msra.mxu1 %v1072_v42 }
  0x23   : > { %v372_v15 = vld [vmem:[%s1989_s26 + $0xa] sm:$0xff]  ;;  %258 = vst.msk [vmem:[#allocation2] sm:$0xff] %vm257_vm0, %v241_v17  ;;  %v2067_v21 = vld [vmem:[%s1989_s26 + $0x60] sm:$0xff]  ;;  %v1588_v37 = vld [vmem:[%s1989_s26 + $0x32] sm:$0xff] }
  0x24   : > { %v242_v16 = vld [vmem:[%s1989_s26 + $0x8] sm:$0xff]  ;;  %266 = vst.msk [vmem:[#allocation2 + $0x40] sm:$0xff] %vm257_vm0, %v2067_v21  ;;  %v2078_v22 = vld [vmem:[%s1989_s26 + $0xb0] sm:$0xff]  ;;  %v2094_v24 = vld [vmem:[%s1989_s26 + $0x79] sm:$0xff] }
  0x25   : > { %419 = vrot.lane.b32.xlu1 %v2020_v8, %s1873_s30  ;;  %403 = vrot.lane.b32.xlu0 %v371_v9, %s1873_s30  ;;  %259 = vst.msk [vmem:[#allocation2 + $0x8] sm:$0xff] %vm257_vm0, %v242_v16  ;;  %v2054_v18 = vld [vmem:[%s1989_s26 + $0xa8] sm:$0xff]  ;;  %v2081_v23 = vld [vmem:[%s1989_s26 + $0x50] sm:$0xff]  ;;  %273 = vst.msk [vmem:[#allocation2 + $0x78] sm:$0xff] %vm257_vm0, %v2078_v22 }
  0x26   : > { %v2057_v19 = vld [vmem:[%s1989_s26 + $0x48] sm:$0xff]  ;;  %272 = vst.msk [vmem:[#allocation2 + $0x70] sm:$0xff] %vm257_vm0, %v2054_v18  ;;  %265 = vst.msk [vmem:[#allocation2 + $0x38] sm:$0xff] %vm257_vm0, %v2081_v23  ;;  %v1522_v25 = vld [vmem:[%s1989_s26 + $0x19] sm:$0xff] }
  0x27   : > { %v2064_v20 = vld [vmem:[%s1989_s26 + $0x68] sm:$0xff]  ;;  %264 = vst.msk [vmem:[#allocation2 + $0x30] sm:$0xff] %vm257_vm0, %v2057_v19  ;;  %v2111_v28 = vld [vmem:[%s1989_s26 + $0x7a] sm:$0xff]  ;;  %v1580_v32 = vld [vmem:[%s1989_s26 + $0x91] sm:$0xff] }
  0x28   : > { %267 = vst.msk [vmem:[#allocation2 + $0x48] sm:$0xff] %vm257_vm0, %v2064_v20  ;;  %v2104_v26 = vld [vmem:[%s1989_s26 + $0x81] sm:$0xff]  ;;  %v1572_v33 = vld [vmem:[%s1989_s26 + $0x31] sm:$0xff]  ;;  %v1581_v34 = vld [vmem:[%s1989_s26 + $0x99] sm:$0xff] }
  0x29   : > { %421 = vrot.lane.b32.xlu1 %v2047_v14, %s1873_s30  ;;  %405 = vrot.lane.b32.xlu0 %v372_v15, %s1873_s30  ;;  %v1523_v27 = vld [vmem:[%s1989_s26 + $0x21] sm:$0xff]  ;;  %v1573_v35 = vld [vmem:[%s1989_s26 + $0x39] sm:$0xff] }
  0x2a   : > { %v1538_v29 = vld [vmem:[%s1989_s26 + $0x1a] sm:$0xff]  ;;  %v2124_v30 = vld [vmem:[%s1989_s26 + $0x82] sm:$0xff]  ;;  %v1583_v61 = vld [vmem:[%s1989_s26 + $0xb1] sm:$0xff] }
  0x2b   : > { %v1539_v31 = vld [vmem:[%s1989_s26 + $0x22] sm:$0xff]  ;;  %v1597_v43 = vld [vmem:[%s1989_s26 + $0x9a] sm:$0xff]  ;;  %v1575_v62 = vld [vmem:[%s1989_s26 + $0x51] sm:$0xff] }
  0x2c   : > { %v1589_v44 = vld [vmem:[%s1989_s26 + $0x3a] sm:$0xff]  ;;  %v1582_v53 = vld [vmem:[%s1989_s26 + $0xa9] sm:$0xff]  ;;  %v1599_v17 = vld [vmem:[%s1989_s26 + $0xb2] sm:$0xff] }
  0x2d   : > { %519 = vrot.lane.b32.xlu1 %v2002_v4, %s2608_s8  ;;  %503 = vrot.lane.b32.xlu0 %v1506_v5, %s2608_s8  ;;  %v1574_v54 = vld [vmem:[%s1989_s26 + $0x49] sm:$0xff] }
  0x2e   : > { %v1598_v1 = vld [vmem:[%s1989_s26 + $0xaa] sm:$0xff] }
  0x2f   : > { %v1590_v5 = vld [vmem:[%s1989_s26 + $0x4a] sm:$0xff] }
  0x30   : > { %v1569_v40 = vld [vmem:[%s1989_s26 + $0xc8] sm:$0xff] }
  0x31   : > { %521 = vrot.lane.b32.xlu1 %v2006_v6, %s2608_s8  ;;  %505 = vrot.lane.b32.xlu0 %v1507_v7, %s2608_s8 }
  0x35   : > { %616 = vrot.lane.b32.xlu1 %v2094_v24, %s1875_s9  ;;  %600 = vrot.lane.b32.xlu0 %v1522_v25, %s1875_s9 }
  0x39   : > { %326 = vrot.lane.b32.xlu1 %v2094_v24, %s1872_s27  ;;  %310 = vrot.lane.b32.xlu0 %v1522_v25, %s1872_s27 }
  0x3d   : > { %618 = vrot.lane.b32.xlu1 %v2104_v26, %s1875_s9  ;;  %602 = vrot.lane.b32.xlu0 %v1523_v27, %s1875_s9 }
  0x41   : > { %713 = vrot.lane.b32.xlu1 %v2111_v28, %s1876_s10  ;;  %697 = vrot.lane.b32.xlu0 %v1538_v29, %s1876_s10 }
  0x45   : > { %328 = vrot.lane.b32.xlu1 %v2104_v26, %s1872_s27  ;;  %312 = vrot.lane.b32.xlu0 %v1523_v27, %s1872_s27 }
  0x49   : > { %423 = vrot.lane.b32.xlu1 %v2111_v28, %s1873_s30  ;;  %407 = vrot.lane.b32.xlu0 %v1538_v29, %s1873_s30 }
  0x4d   : > { %715 = vrot.lane.b32.xlu1 %v2124_v30, %s1876_s10  ;;  %699 = vrot.lane.b32.xlu0 %v1539_v31, %s1876_s10 }
  0x51   : > { %813 = vrot.lane.b32.xlu1 %v2024_v10, %s2612_s12  ;;  %797 = vrot.lane.b32.xlu0 %v2027_v11, %s2612_s12 }
  0x55   : > { %425 = vrot.lane.b32.xlu1 %v2124_v30, %s1873_s30  ;;  %409 = vrot.lane.b32.xlu0 %v1539_v31, %s1873_s30 }
  0x59   : > { %523 = vrot.lane.b32.xlu1 %v2024_v10, %s2608_s8  ;;  %507 = vrot.lane.b32.xlu0 %v2027_v11, %s2608_s8 }
  0x5d   : > { %815 = vrot.lane.b32.xlu1 %v2030_v12, %s2612_s12  ;;  %799 = vrot.lane.b32.xlu0 %v2033_v13, %s2612_s12  ;;  %s2616_s12 = smov 24  }
  0x61   : > { %910 = vrot.lane.b32.xlu1 %v1580_v32, %s2610_s13  ;;  %894 = vrot.lane.b32.xlu0 %v1572_v33, %s2610_s13 }
  0x65   : > { %525 = vrot.lane.b32.xlu1 %v2030_v12, %s2608_s8  ;;  %509 = vrot.lane.b32.xlu0 %v2033_v13, %s2608_s8 }
  0x69   : > { %620 = vrot.lane.b32.xlu1 %v1580_v32, %s1875_s9  ;;  %604 = vrot.lane.b32.xlu0 %v1572_v33, %s1875_s9 }
  0x6d   : > { %912 = vrot.lane.b32.xlu1 %v1581_v34, %s2610_s13  ;;  %896 = vrot.lane.b32.xlu0 %v1573_v35, %s2610_s13  ;;  %s2617_s13 = smov 12  }
  0x71   : > { %1007 = vrot.lane.b32.xlu1 %v1596_v36, %s1879_s14  ;;  %991 = vrot.lane.b32.xlu0 %v1588_v37, %s1879_s14 }
  0x75   : > { %330 = vrot.lane.b32.xlu1 %v1580_v32, %s1872_s27  ;;  %314 = vrot.lane.b32.xlu0 %v1572_v33, %s1872_s27  ;;  %v1568_v33 = vld [vmem:[%s1989_s26 + $0xc0] sm:$0xff] }
  0x79   : > { %622 = vrot.lane.b32.xlu1 %v1581_v34, %s1875_s9  ;;  %606 = vrot.lane.b32.xlu0 %v1573_v35, %s1875_s9 }
  0x7d   : > { %717 = vrot.lane.b32.xlu1 %v1596_v36, %s1876_s10  ;;  %701 = vrot.lane.b32.xlu0 %v1588_v37, %s1876_s10 }
  0x81   : > { %1009 = vrot.lane.b32.xlu1 %v1597_v43, %s1879_s14  ;;  %993 = vrot.lane.b32.xlu0 %v1589_v44, %s1879_s14 }
  0x85   : > { %332 = vrot.lane.b32.xlu1 %v1581_v34, %s1872_s27  ;;  %316 = vrot.lane.b32.xlu0 %v1573_v35, %s1872_s27 }
  0x89   : > { %427 = vrot.lane.b32.xlu1 %v1596_v36, %s1873_s30  ;;  %411 = vrot.lane.b32.xlu0 %v1588_v37, %s1873_s30 }
  0x8d   : > { %719 = vrot.lane.b32.xlu1 %v1597_v43, %s1876_s10  ;;  %703 = vrot.lane.b32.xlu0 %v1589_v44, %s1876_s10 }
  0x8f   : > { %v309_v45 = vpop.permute.xlu1 %308  ;;  %v307_v46 = vpop.permute.xlu0 %306 }
  0x90   : > { %356 = vst.msk [vmem:[#allocation2 + $0x8] sm:$0xff] %vm354_vm2, %v309_v45  ;;  %355 = vst.msk [vmem:[#allocation2] sm:$0xff] %vm354_vm2, %v307_v46 }
  0x91   : > { %817 = vrot.lane.b32.xlu1 %v2054_v18, %s2616_s12  ;;  %801 = vrot.lane.b32.xlu0 %v2057_v19, %s2616_s12 }
  0x93   : > { %v325_v47 = vpop.permute.xlu1 %324  ;;  %v323_v48 = vpop.permute.xlu0 %322 }
  0x94   : > { %364 = vst.msk [vmem:[#allocation2 + $0x48] sm:$0xff] %vm354_vm2, %v325_v47  ;;  %363 = vst.msk [vmem:[#allocation2 + $0x40] sm:$0xff] %vm354_vm2, %v323_v48 }
  0x95   : > { %429 = vrot.lane.b32.xlu1 %v1597_v43, %s1873_s30  ;;  %413 = vrot.lane.b32.xlu0 %v1589_v44, %s1873_s30  ;;  %v1584_v43 = vld [vmem:[%s1989_s26 + $0xc1] sm:$0xff] }
  0x97   : > { %v420_v49 = vpop.permute.xlu1 %419  ;;  %v404_v50 = vpop.permute.xlu0 %403 }
  0x98   : > { %460 = vst.msk [vmem:[#allocation2 + $0x40] sm:$0xff] %vm451_vm3, %v420_v49  ;;  %452 = vst.msk [vmem:[#allocation2] sm:$0xff] %vm451_vm3, %v404_v50  ;;  %v1585_v49 = vld [vmem:[%s1989_s26 + $0xc9] sm:$0xff] }
  0x99   : > { %527 = vrot.lane.b32.xlu1 %v2054_v18, %s2617_s13  ;;  %511 = vrot.lane.b32.xlu0 %v2057_v19, %s2617_s13  ;;  %v1591_v18 = vld [vmem:[%s1989_s26 + $0x52] sm:$0xff] }
  0x9b   : > { %v422_v51 = vpop.permute.xlu1 %421  ;;  %v406_v52 = vpop.permute.xlu0 %405 }
  0x9c   : > { %461 = vst.msk [vmem:[#allocation2 + $0x48] sm:$0xff] %vm451_vm3, %v422_v51  ;;  %453 = vst.msk [vmem:[#allocation2 + $0x8] sm:$0xff] %vm451_vm3, %v406_v52 }
  0x9d   : > { %819 = vrot.lane.b32.xlu1 %v2078_v22, %s2616_s12  ;;  %803 = vrot.lane.b32.xlu0 %v2081_v23, %s2616_s12 }
  0x9f   : > { %v520_v55 = vpop.permute.xlu1 %519  ;;  %v504_v56 = vpop.permute.xlu0 %503 }
  0xa0   : > { %560 = vst.msk [vmem:[#allocation2 + $0x40] sm:$0xff] %vm551_vm4, %v520_v55  ;;  %552 = vst.msk [vmem:[#allocation2] sm:$0xff] %vm551_vm4, %v504_v56 }
  0xa1   : > { %914 = vrot.lane.b32.xlu1 %v1582_v53, %s2618_s15  ;;  %898 = vrot.lane.b32.xlu0 %v1574_v54, %s2618_s15 }
  0xa3   : > { %v522_v57 = vpop.permute.xlu1 %521  ;;  %v506_v58 = vpop.permute.xlu0 %505 }
  0xa4   : > { %561 = vst.msk [vmem:[#allocation2 + $0x48] sm:$0xff] %vm551_vm4, %v522_v57  ;;  %553 = vst.msk [vmem:[#allocation2 + $0x8] sm:$0xff] %vm551_vm4, %v506_v58 }
  0xa5   : > { %529 = vrot.lane.b32.xlu1 %v2078_v22, %s2617_s13  ;;  %513 = vrot.lane.b32.xlu0 %v2081_v23, %s2617_s13 }
  0xa7   : > { %v617_v59 = vpop.permute.xlu1 %616  ;;  %v601_v60 = vpop.permute.xlu0 %600 }
  0xa8   : > { %657 = vst.msk [vmem:[#allocation2 + $0x40] sm:$0xff] %vm648_vm5, %v617_v59  ;;  %649 = vst.msk [vmem:[#allocation2] sm:$0xff] %vm648_vm5, %v601_v60  ;;  %v1601_v59 = vld [vmem:[%s1989_s26 + $0xca] sm:$0xff] }
  0xa9   : > { %624 = vrot.lane.b32.xlu1 %v1582_v53, %s1875_s9  ;;  %608 = vrot.lane.b32.xlu0 %v1574_v54, %s1875_s9 }
  0xab   : > { %v327_v63 = vpop.permute.xlu1 %326  ;;  %v311_v0 = vpop.permute.xlu0 %310 }
  0xac   : > { %365 = vst.msk [vmem:[#allocation2 + $0x50] sm:$0xff] %vm354_vm2, %v327_v63  ;;  %357 = vst.msk [vmem:[#allocation2 + $0x10] sm:$0xff] %vm354_vm2, %v311_v0  ;;  %v1570_v0 = vld [vmem:[%s1989_s26 + $0xd8] sm:$0xff] }
  0xad   : > { %916 = vrot.lane.b32.xlu1 %v1583_v61, %s2618_s15  ;;  %900 = vrot.lane.b32.xlu0 %v1575_v62, %s2618_s15 }
  0xaf   : > { %v619_v7 = vpop.permute.xlu1 %618  ;;  %v603_v9 = vpop.permute.xlu0 %602 }
  0xb0   : > { %658 = vst.msk [vmem:[#allocation2 + $0x48] sm:$0xff] %vm648_vm5, %v619_v7  ;;  %650 = vst.msk [vmem:[#allocation2 + $0x8] sm:$0xff] %vm648_vm5, %v603_v9  ;;  %v1571_v7 = vld [vmem:[%s1989_s26 + $0xe0] sm:$0xff] }
  0xb1   : > { %1011 = vrot.lane.b32.xlu1 %v1598_v1, %s1879_s14  ;;  %995 = vrot.lane.b32.xlu0 %v1590_v5, %s1879_s14 }
  0xb3   : > { %v714_v10 = vpop.permute.xlu1 %713  ;;  %v698_v11 = vpop.permute.xlu0 %697 }
  0xb4   : > { %754 = vst.msk [vmem:[#allocation2 + $0x40] sm:$0xff] %vm745_vm6, %v714_v10  ;;  %746 = vst.msk [vmem:[#allocation2] sm:$0xff] %vm745_vm6, %v698_v11 }
  0xb5   : > { %334 = vrot.lane.b32.xlu1 %v1582_v53, %s1872_s27  ;;  %318 = vrot.lane.b32.xlu0 %v1574_v54, %s1872_s27 }
  0xb7   : > { %v329_v12 = vpop.permute.xlu1 %328  ;;  %v313_v13 = vpop.permute.xlu0 %312 }
  0xb8   : > { %366 = vst.msk [vmem:[#allocation2 + $0x58] sm:$0xff] %vm354_vm2, %v329_v12  ;;  %358 = vst.msk [vmem:[#allocation2 + $0x18] sm:$0xff] %vm354_vm2, %v313_v13 }
  0xb9   : > { %626 = vrot.lane.b32.xlu1 %v1583_v61, %s1875_s9  ;;  %610 = vrot.lane.b32.xlu0 %v1575_v62, %s1875_s9 }
  0xbb   : > { %v424_v15 = vpop.permute.xlu1 %423  ;;  %v408_v16 = vpop.permute.xlu0 %407 }
  0xbc   : > { %462 = vst.msk [vmem:[#allocation2 + $0x50] sm:$0xff] %vm451_vm3, %v424_v15  ;;  %454 = vst.msk [vmem:[#allocation2 + $0x10] sm:$0xff] %vm451_vm3, %v408_v16 }
  0xbd   : > { %721 = vrot.lane.b32.xlu1 %v1598_v1, %s1876_s10  ;;  %705 = vrot.lane.b32.xlu0 %v1590_v5, %s1876_s10 }
  0xbf   : > { %v716_v19 = vpop.permute.xlu1 %715  ;;  %v700_v22 = vpop.permute.xlu0 %699 }
  0xc0   : > { %755 = vst.msk [vmem:[#allocation2 + $0x48] sm:$0xff] %vm745_vm6, %v716_v19  ;;  %747 = vst.msk [vmem:[#allocation2 + $0x8] sm:$0xff] %vm745_vm6, %v700_v22 }
  0xc1   : > { %1013 = vrot.lane.b32.xlu1 %v1599_v17, %s1879_s14  ;;  %997 = vrot.lane.b32.xlu0 %v1591_v18, %s1879_s14 }
  0xc3   : > { %v814_v23 = vpop.permute.xlu1 %813  ;;  %v798_v25 = vpop.permute.xlu0 %797 }
  0xc4   : > { %854 = vst.msk [vmem:[#allocation2 + $0x40] sm:$0xff] %vm845_vm7, %v814_v23  ;;  %846 = vst.msk [vmem:[#allocation2] sm:$0xff] %vm845_vm7, %v798_v25 }
  0xc5   : > { %336 = vrot.lane.b32.xlu1 %v1583_v61, %s1872_s27  ;;  %320 = vrot.lane.b32.xlu0 %v1575_v62, %s1872_s27 }
  0xc7   : > { %v426_v27 = vpop.permute.xlu1 %425  ;;  %v410_v29 = vpop.permute.xlu0 %409 }
  0xc8   : > { %463 = vst.msk [vmem:[#allocation2 + $0x58] sm:$0xff] %vm451_vm3, %v426_v27  ;;  %455 = vst.msk [vmem:[#allocation2 + $0x18] sm:$0xff] %vm451_vm3, %v410_v29 }
  0xc9   : > { %431 = vrot.lane.b32.xlu1 %v1598_v1, %s1873_s30  ;;  %415 = vrot.lane.b32.xlu0 %v1590_v5, %s1873_s30 }
  0xcb   : > { %v524_v31 = vpop.permute.xlu1 %523  ;;  %v508_v32 = vpop.permute.xlu0 %507 }
  0xcc   : > { %562 = vst.msk [vmem:[#allocation2 + $0x50] sm:$0xff] %vm551_vm4, %v524_v31  ;;  %554 = vst.msk [vmem:[#allocation2 + $0x10] sm:$0xff] %vm551_vm4, %v508_v32 }
  0xcd   : > { %723 = vrot.lane.b32.xlu1 %v1599_v17, %s1876_s10  ;;  %707 = vrot.lane.b32.xlu0 %v1591_v18, %s1876_s10 }
  0xcf   : > { %v816_v34 = vpop.permute.xlu1 %815  ;;  %v800_v35 = vpop.permute.xlu0 %799 }
  0xd0   : > { %855 = vst.msk [vmem:[#allocation2 + $0x48] sm:$0xff] %vm845_vm7, %v816_v34  ;;  %847 = vst.msk [vmem:[#allocation2 + $0x8] sm:$0xff] %vm845_vm7, %v800_v35 }
  0xd1   : > { %821 = vrot.lane.b32.xlu1 %v1568_v33, %s2616_s12  ;;  %805 = vrot.lane.b32.xlu0 %v2067_v21, %s2616_s12 }
  0xd3   : > { %v911_v36 = vpop.permute.xlu1 %910  ;;  %v895_v37 = vpop.permute.xlu0 %894 }
  0xd4   : > { %951 = vst.msk [vmem:[#allocation2 + $0x40] sm:$0xff] %vm942_vm8, %v911_v36  ;;  %943 = vst.msk [vmem:[#allocation2] sm:$0xff] %vm942_vm8, %v895_v37 }
  0xd5   : > { %433 = vrot.lane.b32.xlu1 %v1599_v17, %s1873_s30  ;;  %417 = vrot.lane.b32.xlu0 %v1591_v18, %s1873_s30 }
  0xd7   : > { %v526_v38 = vpop.permute.xlu1 %525  ;;  %v510_v39 = vpop.permute.xlu0 %509 }
  0xd8   : > { %563 = vst.msk [vmem:[#allocation2 + $0x58] sm:$0xff] %vm551_vm4, %v526_v38  ;;  %555 = vst.msk [vmem:[#allocation2 + $0x18] sm:$0xff] %vm551_vm4, %v510_v39 }
  0xd9   : > { %531 = vrot.lane.b32.xlu1 %v1568_v33, %s2617_s13  ;;  %515 = vrot.lane.b32.xlu0 %v2067_v21, %s2617_s13 }
  0xdb   : > { %v621_v41 = vpop.permute.xlu1 %620  ;;  %v605_v42 = vpop.permute.xlu0 %604 }
  0xdc   : > { %659 = vst.msk [vmem:[#allocation2 + $0x50] sm:$0xff] %vm648_vm5, %v621_v41  ;;  %651 = vst.msk [vmem:[#allocation2 + $0x10] sm:$0xff] %vm648_vm5, %v605_v42 }
  0xdd   : > { %823 = vrot.lane.b32.xlu1 %v1569_v40, %s2616_s12  ;;  %807 = vrot.lane.b32.xlu0 %v2064_v20, %s2616_s12 }
  0xdf   : > { %v913_v44 = vpop.permute.xlu1 %912  ;;  %v897_v45 = vpop.permute.xlu0 %896 }
  0xe0   : > { %952 = vst.msk [vmem:[#allocation2 + $0x48] sm:$0xff] %vm942_vm8, %v913_v44  ;;  %944 = vst.msk [vmem:[#allocation2 + $0x8] sm:$0xff] %vm942_vm8, %v897_v45 }
  0xe1   : > { %918 = vrot.lane.b32.xlu1 %v1584_v43, %s2618_s15  ;;  %902 = vrot.lane.b32.xlu0 %v1999_v3, %s2618_s15 }
  0xe3   : > { %v1008_v21 = vpop.permute.xlu1 %1007  ;;  %v992_v46 = vpop.permute.xlu0 %991 }
  0xe4   : > { %1048 = vst.msk [vmem:[#allocation2 + $0x40] sm:$0xff] %vm1039_vm9, %v1008_v21  ;;  %1040 = vst.msk [vmem:[#allocation2] sm:$0xff] %vm1039_vm9, %v992_v46 }
  0xe5   : > { %533 = vrot.lane.b32.xlu1 %v1569_v40, %s2617_s13  ;;  %517 = vrot.lane.b32.xlu0 %v2064_v20, %s2617_s13  ;;  %s1631_s13 = sshll.u32 %s1854_s21, 4 }
  0xe7   : > { %v331_v47 = vpop.permute.xlu1 %330  ;;  %v315_v48 = vpop.permute.xlu0 %314 }
  0xe8   : > { %367 = vst.msk [vmem:[#allocation2 + $0x60] sm:$0xff] %vm354_vm2, %v331_v47  ;;  %359 = vst.msk [vmem:[#allocation2 + $0x20] sm:$0xff] %vm354_vm2, %v315_v48 }
  0xe9   : > { %628 = vrot.lane.b32.xlu1 %v1584_v43, %s1875_s9  ;;  %612 = vrot.lane.b32.xlu0 %v1999_v3, %s1875_s9  ;;  %v1600_v3 = vld [vmem:[%s1989_s26 + $0xc2] sm:$0xff] }
  0xeb   : > { %v623_v50 = vpop.permute.xlu1 %622  ;;  %v607_v51 = vpop.permute.xlu0 %606  ;;  %v1056_v52 = vld [vmem:[#allocation2] sm:$0xff] }
  0xec   : > { %v1064_v53 = vld [vmem:[#allocation2 + $0x40] sm:$0xff]  ;;  %660 = vst.msk [vmem:[#allocation2 + $0x58] sm:$0xff] %vm648_vm5, %v623_v50  ;;  %652 = vst.msk [vmem:[#allocation2 + $0x18] sm:$0xff] %vm648_vm5, %v607_v51  ;;  %1663 = vmatprep.mubr.msk.f32.mxu0 %vm1077_vm10, %v1056_v52 }
  0xed   : > { %1675 = vmatprep.mubr.msk.f32.mxu1 %vm1077_vm10, %v1064_v53  ;;  %920 = vrot.lane.b32.xlu1 %v1585_v49, %s2618_s15 }
  0xee   : > { %904 = vrot.lane.b32.xlu0 %v1996_v2, %s2618_s15 }
  0xef   : > { %v718_v20 = vpop.permute.xlu1 %717  ;;  %v702_v54 = vpop.permute.xlu0 %701 }
  0xf0   : > { %756 = vst.msk [vmem:[#allocation2 + $0x50] sm:$0xff] %vm745_vm6, %v718_v20  ;;  %748 = vst.msk [vmem:[#allocation2 + $0x10] sm:$0xff] %vm745_vm6, %v702_v54 }
  0xf1   : > { %1015 = vrot.lane.b32.xlu1 %v1600_v3, %s1879_s14 }
  0xf2   : > { %999 = vrot.lane.b32.xlu0 %v2020_v8, %s1879_s14 }
  0xf3   : > { %v1010_v55 = vpop.permute.xlu1 %1009  ;;  %v994_v56 = vpop.permute.xlu0 %993 }
  0xf4   : > { %1049 = vst.msk [vmem:[#allocation2 + $0x48] sm:$0xff] %vm1039_vm9, %v1010_v55  ;;  %1041 = vst.msk [vmem:[#allocation2 + $0x8] sm:$0xff] %vm1039_vm9, %v994_v56 }
  0xf5   : > { %630 = vrot.lane.b32.xlu1 %v1585_v49, %s1875_s9 }
  0xf6   : > { %614 = vrot.lane.b32.xlu0 %v1996_v2, %s1875_s9  ;;  %s229_s9 = sand.u32 1, %s1846_s19  }
  0xf7   : > { %v333_v57 = vpop.permute.xlu1 %332  ;;  %v317_v58 = vpop.permute.xlu0 %316  ;;  %s1500_s16 = sshll.u32 %s229_s9, 7 }
  0xf8   : > { %368 = vst.msk [vmem:[#allocation2 + $0x68] sm:$0xff] %vm354_vm2, %v333_v57  ;;  %360 = vst.msk [vmem:[#allocation2 + $0x28] sm:$0xff] %vm354_vm2, %v317_v58 }
  0xf9   : > { %725 = vrot.lane.b32.xlu1 %v1600_v3, %s1876_s10 }
  0xfa   : > { %709 = vrot.lane.b32.xlu0 %v2020_v8, %s1876_s10 }
  0xfb   : > { %v428_v60 = vpop.permute.xlu1 %427  ;;  %v412_v61 = vpop.permute.xlu0 %411  ;;  %v1057_v62 = vld [vmem:[#allocation2 + $0x8] sm:$0xff] }
  0xfc   : > { %v1065_v63 = vld [vmem:[#allocation2 + $0x48] sm:$0xff]  ;;  %464 = vst.msk [vmem:[#allocation2 + $0x60] sm:$0xff] %vm451_vm3, %v428_v60  ;;  %456 = vst.msk [vmem:[#allocation2 + $0x20] sm:$0xff] %vm451_vm3, %v412_v61  ;;  %1664 = vmatmul.mubr.msk.f32.vlgmr.msra.gmra.mxu0 %vm1077_vm10, %v1057_v62 }
  0xfd   : > { %1676 = vmatmul.mubr.msk.f32.vlgmr.msra.gmra.mxu1 %vm1077_vm10, %v1065_v63  ;;  %1017 = vrot.lane.b32.xlu1 %v1601_v59, %s1879_s14 }
  0xfe   : > { %1001 = vrot.lane.b32.xlu0 %v2047_v14, %s1879_s14 }
  0xff   : > { %v720_v2 = vpop.permute.xlu1 %719  ;;  %v704_v8 = vpop.permute.xlu0 %703 }
 0x100   : > { %757 = vst.msk [vmem:[#allocation2 + $0x58] sm:$0xff] %vm745_vm6, %v720_v2  ;;  %749 = vst.msk [vmem:[#allocation2 + $0x18] sm:$0xff] %vm745_vm6, %v704_v8 }
 0x101   : > { %727 = vrot.lane.b32.xlu1 %v1601_v59, %s1876_s10 }
 0x102   : > { %711 = vrot.lane.b32.xlu0 %v2047_v14, %s1876_s10  ;;  %v1586_v14 = vld [vmem:[%s1989_s26 + $0xd9] sm:$0xff] }
 0x103   : > { %v818_v1 = vpop.permute.xlu1 %817  ;;  %v802_v5 = vpop.permute.xlu0 %801 }
 0x104   : > { %856 = vst.msk [vmem:[#allocation2 + $0x50] sm:$0xff] %vm845_vm7, %v818_v1  ;;  %848 = vst.msk [vmem:[#allocation2 + $0x10] sm:$0xff] %vm845_vm7, %v802_v5 }
 0x105   : > { %825 = vrot.lane.b32.xlu1 %v1570_v0, %s2616_s12 }
 0x106   : > { %809 = vrot.lane.b32.xlu0 %v2002_v4, %s2616_s12  ;;  %v1587_v4 = vld [vmem:[%s1989_s26 + $0xe1] sm:$0xff] }
 0x107   : > { %v430_v9 = vpop.permute.xlu1 %429  ;;  %v414_v10 = vpop.permute.xlu0 %413 }
 0x108   : > { %465 = vst.msk [vmem:[#allocation2 + $0x68] sm:$0xff] %vm451_vm3, %v430_v9  ;;  %457 = vst.msk [vmem:[#allocation2 + $0x28] sm:$0xff] %vm451_vm3, %v414_v10 }
 0x109   : > { %827 = vrot.lane.b32.xlu1 %v1571_v7, %s2616_s12 }
 0x10a   : > { %811 = vrot.lane.b32.xlu0 %v2006_v6, %s2616_s12  ;;  %v1602_v6 = vld [vmem:[%s1989_s26 + $0xda] sm:$0xff]  ;;  %s2482_s12 = scalar_lea.vmem [#allocation3], %s1500_s16  ;;  %s2550_s16 = scalar_lea.sflag [#allocation4], %s229_s9 }
 0x10b   : > { %v528_v11 = vpop.permute.xlu1 %527  ;;  %v512_v12 = vpop.permute.xlu0 %511 }
 0x10c   : > { %564 = vst.msk [vmem:[#allocation2 + $0x60] sm:$0xff] %vm551_vm4, %v528_v11  ;;  %556 = vst.msk [vmem:[#allocation2 + $0x20] sm:$0xff] %vm551_vm4, %v512_v12 }
 0x10d   : > { %922 = vrot.lane.b32.xlu1 %v1586_v14, %s2618_s15 }
 0x10e   : > { %906 = vrot.lane.b32.xlu0 %v2094_v24, %s2618_s15  ;;  %v1603_v24 = vld [vmem:[%s1989_s26 + $0xe2] sm:$0xff] }
 0x10f   : > { %v820_v13 = vpop.permute.xlu1 %819  ;;  %v804_v15 = vpop.permute.xlu0 %803 }
 0x110   : > { %857 = vst.msk [vmem:[#allocation2 + $0x58] sm:$0xff] %vm845_vm7, %v820_v13  ;;  %849 = vst.msk [vmem:[#allocation2 + $0x18] sm:$0xff] %vm845_vm7, %v804_v15 }
 0x111   : > { %924 = vrot.lane.b32.xlu1 %v1587_v4, %s2618_s15 }
 0x112   : > { %908 = vrot.lane.b32.xlu0 %v2104_v26, %s2618_s15  ;;  %s1627_s15 = sshll.u32 %s1858_s22, 5  ;;  %s1409_s22 = sshll.u32 %s2482_s12, 4  ;;  %s2544_s22 = int_to_ptr.vmem [resolvable:$true] %s1409_s22 }
 0x113   : > { %v915_v16 = vpop.permute.xlu1 %914  ;;  %v899_v17 = vpop.permute.xlu0 %898  ;;  %s1406_s26 = sadd.s32 %s1631_s13, %s1627_s15  ;;  %s1778_s8 = scalar_lea.vmem %s2544_s22, 2048 }
 0x114   : > { %953 = vst.msk [vmem:[#allocation2 + $0x50] sm:$0xff] %vm942_vm8, %v915_v16  ;;  %945 = vst.msk [vmem:[#allocation2 + $0x10] sm:$0xff] %vm942_vm8, %v899_v17  ;;  %s1628_s21 = sshll.u32 %s1406_s26, 7  ;;  %p1779_p13 = scmp.ne.s32.totalorder %s2544_s22, %s1778_s8 }
 0x115   : > { %1019 = vrot.lane.b32.xlu1 %v1602_v6, %s1879_s14  ;;  %s1782_s13 = sshll.u32 %s1880_s17, 4  ;;  %s1783_s13 = int_to_ptr.vmem [resolvable:$false] %s1782_s13 }
 0x116   : > { %1003 = vrot.lane.b32.xlu0 %v2111_v28, %s1879_s14  ;;  %p1780_p0 = pnand %p1779_p13, %p1963_p3  ;;  %s1784_s15 = scalar_lea.vmem %s1783_s13, 4096 }
 0x117   : > { %v530_v18 = vpop.permute.xlu1 %529  ;;  %v514_v19 = vpop.permute.xlu0 %513  ;;  %p1785_p2 = scmp.lt.s32.totalorder %s2544_s22, %s1783_s13  ;;  %p1786_p4 = scmp.lt.s32.totalorder %s1784_s15, %s1778_s8 }
 0x118   : > { %565 = vst.msk [vmem:[#allocation2 + $0x68] sm:$0xff] %vm551_vm4, %v530_v18  ;;  %557 = vst.msk [vmem:[#allocation2 + $0x28] sm:$0xff] %vm551_vm4, %v514_v19  ;;  %p1781_p1 = pneg %p1780_p0 }
 0x119   : > { %1021 = vrot.lane.b32.xlu1 %v1603_v24, %s1879_s14  ;;  %p1787_p5 = por %p1786_p4, %p1785_p2 }
 0x11a   : > { %1005 = vrot.lane.b32.xlu0 %v2124_v30, %s1879_s14  ;;  %s2542_s14 = scalar_lea.hbm %s2607_s5, %s1628_s21 }
 0x11b   : > { %v625_v26 = vpop.permute.xlu1 %624  ;;  %v609_v22 = vpop.permute.xlu0 %608  ;;  %p1788_p6 = pnand %p1787_p5, %p1781_p1 }
 0x11c   : > { %661 = vst.msk [vmem:[#allocation2 + $0x60] sm:$0xff] %vm648_vm5, %v625_v26  ;;  %653 = vst.msk [vmem:[#allocation2 + $0x20] sm:$0xff] %vm648_vm5, %v609_v22 }
 0x11f   : > { %v917_v23 = vpop.permute.xlu1 %916  ;;  %v901_v28 = vpop.permute.xlu0 %900 }
 0x120   : > { %954 = vst.msk [vmem:[#allocation2 + $0x58] sm:$0xff] %vm942_vm8, %v917_v23  ;;  %946 = vst.msk [vmem:[#allocation2 + $0x18] sm:$0xff] %vm942_vm8, %v901_v28 }
 0x123   : > { %v1012_v25 = vpop.permute.xlu1 %1011  ;;  %v996_v27 = vpop.permute.xlu0 %995 }
 0x124   : > { %1050 = vst.msk [vmem:[#allocation2 + $0x50] sm:$0xff] %vm1039_vm9, %v1012_v25  ;;  %1042 = vst.msk [vmem:[#allocation2 + $0x10] sm:$0xff] %vm1039_vm9, %v996_v27 }
 0x127   : > { %v335_v29 = vpop.permute.xlu1 %334  ;;  %v319_v30 = vpop.permute.xlu0 %318 }
 0x128   : > { %369 = vst.msk [vmem:[#allocation2 + $0x70] sm:$0xff] %vm354_vm2, %v335_v29  ;;  %361 = vst.msk [vmem:[#allocation2 + $0x30] sm:$0xff] %vm354_vm2, %v319_v30  ;;  %v2457_v29 = vld [vmem:[%s2604_s2] ss:$0 sm:$0xff] }
 0x12b   : > { %v627_v31 = vpop.permute.xlu1 %626  ;;  %v611_v32 = vpop.permute.xlu0 %610  ;;  %v1058_v33 = vld [vmem:[#allocation2 + $0x10] sm:$0xff] }
 0x12c   : > { %v1066_v34 = vld [vmem:[#allocation2 + $0x50] sm:$0xff]  ;;  %662 = vst.msk [vmem:[#allocation2 + $0x68] sm:$0xff] %vm648_vm5, %v627_v31  ;;  %654 = vst.msk [vmem:[#allocation2 + $0x28] sm:$0xff] %vm648_vm5, %v611_v32  ;;  %1666 = vmatprep.mubr.msk.f32.mxu0 %vm1077_vm10, %v1058_v33  ;;  %v2463_v31 = vld [vmem:[%s2605_s3] ss:$0 sm:$0xff] }
 0x12d   : > { %1678 = vmatprep.mubr.msk.f32.mxu1 %vm1077_vm10, %v1066_v34 }
 0x12f   : > { %v722_v35 = vpop.permute.xlu1 %721  ;;  %v706_v36 = vpop.permute.xlu0 %705 }
 0x130   : > { %758 = vst.msk [vmem:[#allocation2 + $0x60] sm:$0xff] %vm745_vm6, %v722_v35  ;;  %750 = vst.msk [vmem:[#allocation2 + $0x20] sm:$0xff] %vm745_vm6, %v706_v36  ;;  %v2472_v35 = vld [vmem:[%s2606_s4] ss:$0 sm:$0xff] }
 0x133   : > { %v1014_v37 = vpop.permute.xlu1 %1013  ;;  %v998_v38 = vpop.permute.xlu0 %997 }
 0x134   : > { %1051 = vst.msk [vmem:[#allocation2 + $0x58] sm:$0xff] %vm1039_vm9, %v1014_v37  ;;  %1043 = vst.msk [vmem:[#allocation2 + $0x18] sm:$0xff] %vm1039_vm9, %v998_v38 }
 0x137   : > { %v337_v39 = vpop.permute.xlu1 %336  ;;  %v321_v40 = vpop.permute.xlu0 %320 }
 0x138   : > { %370 = vst.msk [vmem:[#allocation2 + $0x78] sm:$0xff] %vm354_vm2, %v337_v39  ;;  %362 = vst.msk [vmem:[#allocation2 + $0x38] sm:$0xff] %vm354_vm2, %v321_v40 }
 0x13b   : > { %v432_v41 = vpop.permute.xlu1 %431  ;;  %v416_v42 = vpop.permute.xlu0 %415  ;;  %v1059_v43 = vld [vmem:[#allocation2 + $0x18] sm:$0xff] }
 0x13c   : > { %v1067_v44 = vld [vmem:[#allocation2 + $0x58] sm:$0xff]  ;;  %466 = vst.msk [vmem:[#allocation2 + $0x70] sm:$0xff] %vm451_vm3, %v432_v41  ;;  %458 = vst.msk [vmem:[#allocation2 + $0x30] sm:$0xff] %vm451_vm3, %v416_v42  ;;  %1667 = vmatmul.mubr.msk.f32.gmra.mxu0 %vm1077_vm10, %v1059_v43 }
 0x13d   : > { %1679 = vmatmul.mubr.msk.f32.gmra.mxu1 %vm1077_vm10, %v1067_v44 }
 0x13f   : > { %v724_v45 = vpop.permute.xlu1 %723  ;;  %v708_v21 = vpop.permute.xlu0 %707 }
 0x140   : > { %759 = vst.msk [vmem:[#allocation2 + $0x68] sm:$0xff] %vm745_vm6, %v724_v45  ;;  %751 = vst.msk [vmem:[#allocation2 + $0x28] sm:$0xff] %vm745_vm6, %v708_v21 }
 0x143   : > { %v822_v46 = vpop.permute.xlu1 %821  ;;  %v806_v47 = vpop.permute.xlu0 %805 }
 0x144   : > { %858 = vst.msk [vmem:[#allocation2 + $0x60] sm:$0xff] %vm845_vm7, %v822_v46  ;;  %850 = vst.msk [vmem:[#allocation2 + $0x20] sm:$0xff] %vm845_vm7, %v806_v47 }
 0x147   : > { %v434_v48 = vpop.permute.xlu1 %433  ;;  %v418_v49 = vpop.permute.xlu0 %417 }
 0x148   : > { %467 = vst.msk [vmem:[#allocation2 + $0x78] sm:$0xff] %vm451_vm3, %v434_v48  ;;  %459 = vst.msk [vmem:[#allocation2 + $0x38] sm:$0xff] %vm451_vm3, %v418_v49 }
 0x14b   : > { %v532_v50 = vpop.permute.xlu1 %531  ;;  %v516_v51 = vpop.permute.xlu0 %515 }
 0x14c   : > { %566 = vst.msk [vmem:[#allocation2 + $0x70] sm:$0xff] %vm551_vm4, %v532_v50  ;;  %558 = vst.msk [vmem:[#allocation2 + $0x30] sm:$0xff] %vm551_vm4, %v516_v51 }
 0x14f   : > { %v824_v52 = vpop.permute.xlu1 %823  ;;  %v808_v53 = vpop.permute.xlu0 %807 }
 0x150   : > { %859 = vst.msk [vmem:[#allocation2 + $0x68] sm:$0xff] %vm845_vm7, %v824_v52  ;;  %851 = vst.msk [vmem:[#allocation2 + $0x28] sm:$0xff] %vm845_vm7, %v808_v53 }
 0x153   : > { %v919_v3 = vpop.permute.xlu1 %918  ;;  %v903_v20 = vpop.permute.xlu0 %902 }
 0x154   : > { %955 = vst.msk [vmem:[#allocation2 + $0x60] sm:$0xff] %vm942_vm8, %v919_v3  ;;  %947 = vst.msk [vmem:[#allocation2 + $0x20] sm:$0xff] %vm942_vm8, %v903_v20 }
 0x157   : > { %v534_v54 = vpop.permute.xlu1 %533  ;;  %v518_v55 = vpop.permute.xlu0 %517 }
 0x158   : > { %567 = vst.msk [vmem:[#allocation2 + $0x78] sm:$0xff] %vm551_vm4, %v534_v54  ;;  %559 = vst.msk [vmem:[#allocation2 + $0x38] sm:$0xff] %vm551_vm4, %v518_v55 }
 0x15b   : > { %v629_v56 = vpop.permute.xlu1 %628  ;;  %v613_v57 = vpop.permute.xlu0 %612 }
 0x15c   : > { %663 = vst.msk [vmem:[#allocation2 + $0x70] sm:$0xff] %vm648_vm5, %v629_v56  ;;  %655 = vst.msk [vmem:[#allocation2 + $0x30] sm:$0xff] %vm648_vm5, %v613_v57 }
 0x15f   : > { %v921_v58 = vpop.permute.xlu1 %920 }
 0x160   : > { %v905_v59 = vpop.permute.xlu0 %904  ;;  %956 = vst.msk [vmem:[#allocation2 + $0x68] sm:$0xff] %vm942_vm8, %v921_v58 }
 0x161   : > { %948 = vst.msk [vmem:[#allocation2 + $0x28] sm:$0xff] %vm942_vm8, %v905_v59 }
 0x163   : > { %v1016_v60 = vpop.permute.xlu1 %1015 }
 0x164   : > { %v1000_v61 = vpop.permute.xlu0 %999  ;;  %1052 = vst.msk [vmem:[#allocation2 + $0x60] sm:$0xff] %vm1039_vm9, %v1016_v60 }
 0x165   : > { %1044 = vst.msk [vmem:[#allocation2 + $0x20] sm:$0xff] %vm1039_vm9, %v1000_v61 }
 0x167   : > { %v631_v62 = vpop.permute.xlu1 %630 }
 0x168   : > { %v615_v63 = vpop.permute.xlu0 %614  ;;  %664 = vst.msk [vmem:[#allocation2 + $0x78] sm:$0xff] %vm648_vm5, %v631_v62 }
 0x169   : > { %656 = vst.msk [vmem:[#allocation2 + $0x38] sm:$0xff] %vm648_vm5, %v615_v63 }
 0x16b   : > { %v726_v2 = vpop.permute.xlu1 %725  ;;  %v1068_v1 = vld [vmem:[#allocation2 + $0x60] sm:$0xff] }
 0x16c   : > { %v710_v8 = vpop.permute.xlu0 %709  ;;  %v1060_v0 = vld [vmem:[#allocation2 + $0x20] sm:$0xff]  ;;  %760 = vst.msk [vmem:[#allocation2 + $0x70] sm:$0xff] %vm745_vm6, %v726_v2  ;;  %1681 = vmatprep.mubr.msk.f32.mxu1 %vm1077_vm10, %v1068_v1 }
 0x16d   : > { %752 = vst.msk [vmem:[#allocation2 + $0x30] sm:$0xff] %vm745_vm6, %v710_v8  ;;  %1669 = vmatprep.mubr.msk.f32.mxu0 %vm1077_vm10, %v1060_v0 }
 0x16f   : > { %v1018_v5 = vpop.permute.xlu1 %1017 }
 0x170   : > { %v1002_v7 = vpop.permute.xlu0 %1001  ;;  %1053 = vst.msk [vmem:[#allocation2 + $0x68] sm:$0xff] %vm1039_vm9, %v1018_v5 }
 0x171   : > { %1045 = vst.msk [vmem:[#allocation2 + $0x28] sm:$0xff] %vm1039_vm9, %v1002_v7 }
 0x173   : > { %v728_v9 = vpop.permute.xlu1 %727 }
 0x174   : > { %v712_v10 = vpop.permute.xlu0 %711  ;;  %761 = vst.msk [vmem:[#allocation2 + $0x78] sm:$0xff] %vm745_vm6, %v728_v9 }
 0x175   : > { %753 = vst.msk [vmem:[#allocation2 + $0x38] sm:$0xff] %vm745_vm6, %v712_v10 }
 0x177   : > { %v826_v14 = vpop.permute.xlu1 %825  ;;  %v1069_v4 = vld [vmem:[#allocation2 + $0x68] sm:$0xff] }
 0x178   : > { %v810_v11 = vpop.permute.xlu0 %809  ;;  %v1061_v12 = vld [vmem:[#allocation2 + $0x28] sm:$0xff]  ;;  %860 = vst.msk [vmem:[#allocation2 + $0x70] sm:$0xff] %vm845_vm7, %v826_v14  ;;  %1682 = vmatmul.mubr.msk.f32.gmra.mxu1 %vm1077_vm10, %v1069_v4 }
 0x179   : > { %852 = vst.msk [vmem:[#allocation2 + $0x30] sm:$0xff] %vm845_vm7, %v810_v11  ;;  %1670 = vmatmul.mubr.msk.f32.gmra.mxu0 %vm1077_vm10, %v1061_v12 }
 0x17b   : > { %v828_v13 = vpop.permute.xlu1 %827 }
 0x17c   : > { %v812_v15 = vpop.permute.xlu0 %811  ;;  %861 = vst.msk [vmem:[#allocation2 + $0x78] sm:$0xff] %vm845_vm7, %v828_v13 }
 0x17d   : > { %853 = vst.msk [vmem:[#allocation2 + $0x38] sm:$0xff] %vm845_vm7, %v812_v15 }
 0x17f   : > { %v923_v6 = vpop.permute.xlu1 %922 }
 0x180   : > { %v907_v16 = vpop.permute.xlu0 %906  ;;  %957 = vst.msk [vmem:[#allocation2 + $0x70] sm:$0xff] %vm942_vm8, %v923_v6 }
 0x181   : > { %949 = vst.msk [vmem:[#allocation2 + $0x30] sm:$0xff] %vm942_vm8, %v907_v16 }
 0x183   : > { %v925_v17 = vpop.permute.xlu1 %924 }
 0x184   : > { %v909_v24 = vpop.permute.xlu0 %908  ;;  %958 = vst.msk [vmem:[#allocation2 + $0x78] sm:$0xff] %vm942_vm8, %v925_v17 }
 0x185   : > { %950 = vst.msk [vmem:[#allocation2 + $0x38] sm:$0xff] %vm942_vm8, %v909_v24 }
 0x187   : > { %v1020_v18 = vpop.permute.xlu1 %1019 }
 0x188   : > { %v1004_v19 = vpop.permute.xlu0 %1003  ;;  %1054 = vst.msk [vmem:[#allocation2 + $0x70] sm:$0xff] %vm1039_vm9, %v1020_v18 }
 0x189   : > { %1046 = vst.msk [vmem:[#allocation2 + $0x30] sm:$0xff] %vm1039_vm9, %v1004_v19 }
 0x18b   : > { %v1022_v26 = vpop.permute.xlu1 %1021 }
 0x18c   : > { %v1006_v22 = vpop.permute.xlu0 %1005  ;;  %1055 = vst.msk [vmem:[#allocation2 + $0x78] sm:$0xff] %vm1039_vm9, %v1022_v26 }
 0x18d   : > { %1047 = vst.msk [vmem:[#allocation2 + $0x38] sm:$0xff] %vm1039_vm9, %v1006_v22 }
 0x18f   : > { %v1070_v28 = vld [vmem:[#allocation2 + $0x70] sm:$0xff] }
 0x190   : > { %v1062_v23 = vld [vmem:[#allocation2 + $0x30] sm:$0xff]  ;;  %1684 = vmatprep.mubr.msk.f32.mxu1 %vm1077_vm10, %v1070_v28 }
 0x191   : > { %1672 = vmatprep.mubr.msk.f32.mxu0 %vm1077_vm10, %v1062_v23 }
 0x193   : > { %v1071_v27 = vld [vmem:[#allocation2 + $0x78] sm:$0xff] }
 0x194   : > { %v1063_v25 = vld [vmem:[#allocation2 + $0x38] sm:$0xff]  ;;  %1685 = vmatmul.mubr.msk.f32.gmra.mxu1 %vm1077_vm10, %v1071_v27 }
 0x195   : > { %1673 = vmatmul.mubr.msk.f32.gmra.mxu0 %vm1077_vm10, %v1063_v25 }
 0x1bc   : > { %v1665_v30 = vpop.f32.mrf.mxu0 }
 0x1bd   : > { %v1677_v32 = vpop.f32.mrf.mxu1  ;;  %v1283_v33 = vmul.f32 %v1665_v30, %v2457_v29 }
 0x1be   : > { %v1291_v34 = vmul.f32 %v1677_v32, %v2457_v29  ;;  %v1196_v36 = vpop.f32.mrf.mxu0 }
 0x1bf   : > { %v1236_v37 = vpop.f32.mrf.mxu1  ;;  %v1306_v38 = vadd.f32 %v2463_v31, %v1283_v33  ;;  %v1282_v40 = vmul.f32 %v2457_v29, %v1196_v36 }
 0x1c0   : > { %v1314_v39 = vadd.f32 %v2463_v31, %v1291_v34  ;;  %v1290_v41 = vmul.f32 %v2457_v29, %v1236_v37 }
 0x1c1   : > { %vm1322_vm11 = vcmp.gt.f32.partialorder %v1306_v38, 0.0  ;;  %v1345_v42 = vmul.f32 %v2472_v35, %v1306_v38  ;;  %v1305_v44 = vadd.f32 %v2463_v31, %v1282_v40 }
 0x1c2   : > { %vm1330_vm12 = vcmp.gt.f32.partialorder %v1314_v39, 0.0  ;;  %v1353_v43 = vmul.f32 %v2472_v35, %v1314_v39  ;;  %v1313_v45 = vadd.f32 %v2463_v31, %v1290_v41 }
 0x1c3   : > { %v1361_v21 = vsel %vm1322_vm11, %v1306_v38, %v1345_v42  ;;  %vm1321_vm13 = vcmp.gt.f32.partialorder %v1305_v44, 0.0  ;;  %v1344_v47 = vmul.f32 %v2472_v35, %v1305_v44 }
 0x1c4   : > { %v1369_v46 = vsel %vm1330_vm12, %v1314_v39, %v1353_v43  ;;  %1377 = vst [vmem:[%s2482_s12 + $0x8] sm:$0xff] %v1361_v21  ;;  %vm1329_vm14 = vcmp.gt.f32.partialorder %v1313_v45, 0.0  ;;  %v1352_v48 = vmul.f32 %v2472_v35, %v1313_v45 }
 0x1c5   : > { %1385 = vst [vmem:[%s2482_s12 + $0x48] sm:$0xff] %v1369_v46  ;;  %v1360_v49 = vsel %vm1321_vm13, %v1305_v44, %v1344_v47 }
 0x1c6   : > { %v1368_v50 = vsel %vm1329_vm14, %v1313_v45, %v1352_v48  ;;  %1376 = vst [vmem:[%s2482_s12] sm:$0xff] %v1360_v49 }
 0x1c7   : > { %1384 = vst [vmem:[%s2482_s12 + $0x40] sm:$0xff] %v1368_v50 }
 0x1fc   : > { %v1668_v51 = vpop.f32.mrf.mxu0 }
 0x1fd   : > { %v1680_v52 = vpop.f32.mrf.mxu1  ;;  %v1285_v53 = vmul.f32 %v1668_v51, %v2457_v29 }
 0x1fe   : > { %v1293_v3 = vmul.f32 %v1680_v52, %v2457_v29  ;;  %v1206_v20 = vpop.f32.mrf.mxu0 }
 0x1ff   : > { %v1246_v54 = vpop.f32.mrf.mxu1  ;;  %v1308_v55 = vadd.f32 %v2463_v31, %v1285_v53  ;;  %v1284_v57 = vmul.f32 %v2457_v29, %v1206_v20 }
 0x200   : > { %v1316_v56 = vadd.f32 %v2463_v31, %v1293_v3  ;;  %v1292_v58 = vmul.f32 %v2457_v29, %v1246_v54 }
 0x201   : > { %vm1324_vm15 = vcmp.gt.f32.partialorder %v1308_v55, 0.0  ;;  %v1347_v59 = vmul.f32 %v2472_v35, %v1308_v55  ;;  %v1307_v61 = vadd.f32 %v2463_v31, %v1284_v57 }
 0x202   : > { %vm1332_vm0 = vcmp.gt.f32.partialorder %v1316_v56, 0.0  ;;  %v1355_v60 = vmul.f32 %v2472_v35, %v1316_v56  ;;  %v1315_v62 = vadd.f32 %v2463_v31, %v1292_v58 }
 0x203   : > { %v1363_v63 = vsel %vm1324_vm15, %v1308_v55, %v1347_v59  ;;  %vm1323_vm1 = vcmp.gt.f32.partialorder %v1307_v61, 0.0  ;;  %v1346_v8 = vmul.f32 %v2472_v35, %v1307_v61 }
 0x204   : > { %v1371_v2 = vsel %vm1332_vm0, %v1316_v56, %v1355_v60  ;;  %1379 = vst [vmem:[%s2482_s12 + $0x18] sm:$0xff] %v1363_v63  ;;  %vm1331_vm2 = vcmp.gt.f32.partialorder %v1315_v62, 0.0  ;;  %v1354_v0 = vmul.f32 %v2472_v35, %v1315_v62 }
 0x205   : > { %1387 = vst [vmem:[%s2482_s12 + $0x58] sm:$0xff] %v1371_v2  ;;  %v1362_v1 = vsel %vm1323_vm1, %v1307_v61, %v1346_v8 }
 0x206   : > { %v1370_v5 = vsel %vm1331_vm2, %v1315_v62, %v1354_v0  ;;  %1378 = vst [vmem:[%s2482_s12 + $0x10] sm:$0xff] %v1362_v1 }
 0x207   : > { %1386 = vst [vmem:[%s2482_s12 + $0x50] sm:$0xff] %v1370_v5 }
 0x238   : > { %v1683_v9 = vpop.f32.mrf.mxu1 }
 0x239   : > { %v1671_v7 = vpop.f32.mrf.mxu0  ;;  %v1295_v14 = vmul.f32 %v1683_v9, %v2457_v29 }
 0x23a   : > { %v1287_v10 = vmul.f32 %v1671_v7, %v2457_v29  ;;  %v1256_v12 = vpop.f32.mrf.mxu1 }
 0x23b   : > { %v1216_v11 = vpop.f32.mrf.mxu0  ;;  %v1318_v13 = vadd.f32 %v2463_v31, %v1295_v14  ;;  %v1294_v6 = vmul.f32 %v2457_v29, %v1256_v12 }
 0x23c   : > { %v1310_v4 = vadd.f32 %v2463_v31, %v1287_v10  ;;  %v1286_v15 = vmul.f32 %v2457_v29, %v1216_v11 }
 0x23d   : > { %vm1334_vm4 = vcmp.gt.f32.partialorder %v1318_v13, 0.0  ;;  %v1357_v17 = vmul.f32 %v2472_v35, %v1318_v13  ;;  %v1317_v18 = vadd.f32 %v2463_v31, %v1294_v6 }
 0x23e   : > { %vm1326_vm3 = vcmp.gt.f32.partialorder %v1310_v4, 0.0  ;;  %v1349_v16 = vmul.f32 %v2472_v35, %v1310_v4  ;;  %v1309_v24 = vadd.f32 %v2463_v31, %v1286_v15 }
 0x23f   : > { %v1373_v26 = vsel %vm1334_vm4, %v1318_v13, %v1357_v17  ;;  %vm1333_vm6 = vcmp.gt.f32.partialorder %v1317_v18, 0.0  ;;  %v1356_v23 = vmul.f32 %v2472_v35, %v1317_v18 }
 0x240   : > { %v1365_v19 = vsel %vm1326_vm3, %v1310_v4, %v1349_v16  ;;  %1389 = vst [vmem:[%s2482_s12 + $0x68] sm:$0xff] %v1373_v26  ;;  %vm1325_vm5 = vcmp.gt.f32.partialorder %v1309_v24, 0.0  ;;  %v1348_v22 = vmul.f32 %v2472_v35, %v1309_v24 }
 0x241   : > { %1381 = vst [vmem:[%s2482_s12 + $0x28] sm:$0xff] %v1365_v19  ;;  %v1372_v25 = vsel %vm1333_vm6, %v1317_v18, %v1356_v23 }
 0x242   : > { %v1364_v28 = vsel %vm1325_vm5, %v1309_v24, %v1348_v22  ;;  %1388 = vst [vmem:[%s2482_s12 + $0x60] sm:$0xff] %v1372_v25 }
 0x243   : > { %1380 = vst [vmem:[%s2482_s12 + $0x20] sm:$0xff] %v1364_v28 }
 0x254   : > { %v1686_v30 = vpop.f32.mrf.mxu1 }
 0x255   : > { %v1674_v27 = vpop.f32.mrf.mxu0  ;;  %v1297_v33 = vmul.f32 %v1686_v30, %v2457_v29 }
 0x256   : > { %v1289_v32 = vmul.f32 %v1674_v27, %v2457_v29  ;;  %v1266_v36 = vpop.f32.mrf.mxu1 }
 0x257   : > { %v1226_v34 = vpop.f32.mrf.mxu0  ;;  %v1320_v38 = vadd.f32 %v2463_v31, %v1297_v33  ;;  %v1296_v40 = vmul.f32 %v2457_v29, %v1266_v36 }
 0x258   : > { %v1312_v37 = vadd.f32 %v2463_v31, %v1289_v32  ;;  %v1288_v39 = vmul.f32 %v2457_v29, %v1226_v34 }
 0x259   : > { %vm1336_vm8 = vcmp.gt.f32.partialorder %v1320_v38, 0.0  ;;  %v1359_v42 = vmul.f32 %v2472_v35, %v1320_v38  ;;  %v1319_v44 = vadd.f32 %v2463_v31, %v1296_v40 }
 0x25a   : > { %vm1328_vm7 = vcmp.gt.f32.partialorder %v1312_v37, 0.0  ;;  %v1351_v41 = vmul.f32 %v2472_v35, %v1312_v37  ;;  %v1311_v43 = vadd.f32 %v2463_v31, %v1288_v39 }
 0x25b   : > { %v1375_v21 = vsel %vm1336_vm8, %v1320_v38, %v1359_v42  ;;  %vm1335_vm10 = vcmp.gt.f32.partialorder %v1319_v44, 0.0  ;;  %v1358_v46 = vmul.f32 %v2472_v35, %v1319_v44 }
 0x25c   : > { %v1367_v45 = vsel %vm1328_vm7, %v1312_v37, %v1351_v41  ;;  %1391 = vst [vmem:[%s2482_s12 + $0x78] sm:$0xff] %v1375_v21  ;;  %vm1327_vm9 = vcmp.gt.f32.partialorder %v1311_v43, 0.0  ;;  %v1350_v29 = vmul.f32 %v2472_v35, %v1311_v43 }
 0x25d   : > { %1383 = vst [vmem:[%s2482_s12 + $0x38] sm:$0xff] %v1367_v45  ;;  %v1374_v47 = vsel %vm1335_vm10, %v1319_v44, %v1358_v46 }
 0x25e   : > { %v1366_v31 = vsel %vm1327_vm9, %v1311_v43, %v1350_v29  ;;  %1390 = vst [vmem:[%s2482_s12 + $0x70] sm:$0xff] %v1374_v47 }
 0x25f   : > { %1382 = vst [vmem:[%s2482_s12 + $0x30] sm:$0xff] %v1366_v31 }
 0x260   : > { %1791 = shalt.err (!%p1788_p6)
}
 0x261   : > { %s1792_s9 = scalar_lea.hbm %s2542_s14, 2048  ;;  %s1796_s21 = scalar_lea.hbm %s2607_s5, 8192 }
 0x262   : > { %p1793_p7 = scmp.ne.s32.totalorder %s2542_s14, %s1792_s9  ;;  %p1797_p11 = scmp.lt.s32.totalorder %s2542_s14, %s2607_s5 }
 0x263   : > { %p1798_p12 = scmp.lt.s32.totalorder %s1796_s21, %s1792_s9 }
 0x264   : > { %p1794_p9 = pnand %p1793_p7, %p1963_p3 }
 0x265   : > { %p1799_p13 = por %p1798_p12, %p1797_p11 }
 0x266   : > { %p1795_p10 = pneg %p1794_p9 }
 0x268   : > { %p1800_p0 = pnand %p1799_p13, %p1795_p10 }
 0x26a   : > { %1803 = shalt.err (!%p1800_p0)
}
 0x26b   : > { %s1881_s8 = smov 128  }
 0x26c   : > { %1698 = dma.vmem_to_hbm [thread:$0]  (%p1963_p3), %s2544_s22, 2048, %s2542_s14, %s2550_s16, %s1881_s8, %s1881_s8, %s1873_s30  }
 0x26d PF: > { %p1704_p1 = scmp.ge.s32.totalorder %s1870_s25, 2  ;;  %s1424_s17 = sand.u32 1, %s1842_s18  }
 0x26e   : > { %s1425_s13 = scalar_lea.sflag [#allocation4], %s1424_s17 }
 0x26f   : > { %p1701_p2 = pnand %p1704_p1, %p1972_p8 }
 0x271   : > { %p1702_p4 = pneg %p1701_p2 }
 0x273   : > { %1837 = dma.done.wait (%p1702_p4), %s1425_s13, 2048  }
 0x274   : > { %1839 = vsyncadd (%p1702_p4), %s1425_s13, 4294965248  ;;  %s18_s25 = sadd.s32 1, %s1870_s25   ;;  %s2619_s18 = smov %s1846_s19 }
 0x275   : > { %p15_p5 = scmp.ge.s32.totalorder %s18_s25, 6   ;;  %s2620_s19 = smov %s1850_s20 }
 0x276   : > { %s2621_s20 = smov %s1981_s11  ;;  %s2622_s21 = smov %s1862_s23 }
 0x277   : > { %s2623_s22 = smov %s1866_s24  ;;  %s2624_s23 = smov %s2627_s28 }
 0x278   : > { %s2625_s24 = smov %s2631_s29  ;;  %17 = sbr.rel (!%p15_p5) target bundleno = 5 (0x5), region = 78 }
 0x27d   :  { %1430 = vsyncpa [#allocation4], 1 }
 0x27e   :  { %1432 = vsyncpa [#allocation4 + $0x1], 1 }

</bundles_post_ra>
